<compile_context>
chip_gen: v7x
topology: tpu7x:2x2x1
jax: 0.10.0
libtpu: 0.0.40
codegen_flags: <defaults>
</compile_context>

<pallas_src>
import functools

import jax
import jax.numpy as jnp
from jax import lax
from jax.experimental import pallas as pl
from jax.experimental.pallas import tpu as pltpu

NEG_INF = -1e30  # scores kept in f32


def _default_vmem_limit():
    cap = 128 * 1024 * 1024
    try:
        info = pltpu.get_tpu_info()
        cap = int(getattr(info, "vmem_capacity_bytes", cap))
    except Exception:
        pass
    # Leave headroom for Mosaic-internal scratch: ~96 MiB on v5e/v6e (128 MiB
    # physical), ~48 MiB on v7x (64 MiB physical).
    return min(int(cap * 3 // 4), 100 * 1024 * 1024)


VMEM_LIMIT = _default_vmem_limit()


def _tile(n, cap, align):
    """Largest multiple of `align` that divides n and is <= cap.  Falls back to
    the full dim (always a legal block size) when n is not align-divisible."""
    if n % align != 0:
        return n
    cap = max(align, min(cap, n))
    cap -= cap % align
    for c in range(cap, 0, -align):
        if n % c == 0:
            return c
    return n


# ------------------- fused RMSNorm (+residual) + matmul (QKV proj) -------------------
def _norm_matmul_kernel(*refs, eps, add_residual):
    if add_residual:
        x_ref, res_ref, ln_ref, w_ref, o_ref, newres_ref, xn_s = refs
    else:
        x_ref, ln_ref, w_ref, o_ref, newres_ref, xn_s = refs
        res_ref = None

    # Norm computed once per row tile (j == 0), cached in VMEM in the model dtype.
    @pl.when(pl.program_id(1) == 0)
    def _():
        x = x_ref[...].astype(jnp.float32)
        if add_residual:
            x = x + res_ref[...].astype(jnp.float32)
        newres_ref[...] = x.astype(newres_ref.dtype)
        var = jnp.mean(x * x, axis=-1, keepdims=True)
        xn_s[...] = (x * lax.rsqrt(var + eps) * ln_ref[...]).astype(xn_s.dtype)

    o_ref[...] = jnp.dot(xn_s[...], w_ref[...],
                         preferred_element_type=jnp.float32).astype(o_ref.dtype)


def fused_norm_matmul(x, ln_w, w, eps, residual=None, m_block=256, n_block=512):
    """y = rmsnorm(x [+ residual]) @ w ; also returns the new residual stream.
    K (= hidden) is kept untiled so the row norm can be fused; N is tiled."""
    S, K = x.shape
    N = w.shape[1]
    tm = _tile(S, m_block, 8)
    tn = _tile(N, n_block, 128)
    add_residual = residual is not None

    x_spec = pl.BlockSpec((tm, K), lambda i, j: (i, 0))
    in_specs = [x_spec]
    args = [x]
    if add_residual:
        in_specs.append(x_spec)
        args.append(residual)
    in_specs += [pl.BlockSpec((1, K), lambda i, j: (0, 0)),
                 pl.BlockSpec((K, tn), lambda i, j: (0, j))]
    args += [ln_w.reshape(1, -1), w]

    return pl.pallas_call(
        functools.partial(_norm_matmul_kernel, eps=eps, add_residual=add_residual),
        out_shape=(jax.ShapeDtypeStruct((S, N), x.dtype),
                   jax.ShapeDtypeStruct((S, K), x.dtype)),
        grid=(S // tm, N // tn),
        in_specs=in_specs,
        out_specs=(pl.BlockSpec((tm, tn), lambda i, j: (i, j)),
                   pl.BlockSpec((tm, K), lambda i, j: (i, 0))),
        scratch_shapes=[pltpu.VMEM((tm, K), x.dtype)],   # cached normed activation
        compiler_params=pltpu.CompilerParams(
            dimension_semantics=("parallel", "arbitrary"),
            vmem_limit_bytes=VMEM_LIMIT),
    )(*args)


# ------------------------------ generic tiled matmul (O proj) ------------------------------
def _matmul_kernel(x_ref, w_ref, o_ref, acc_ref):
    @pl.when(pl.program_id(2) == 0)
    def _():
        acc_ref[...] = jnp.zeros_like(acc_ref)

    acc_ref[...] += jnp.dot(x_ref[...], w_ref[...],
                            preferred_element_type=jnp.float32)

    @pl.when(pl.program_id(2) == pl.num_programs(2) - 1)
    def _():
        o_ref[...] = acc_ref[...].astype(o_ref.dtype)


def matmul(x, w, m_block=256, n_block=512, k_block=512):
    M, K = x.shape
    _, N = w.shape
    tm = _tile(M, m_block, 8)
    tn = _tile(N, n_block, 128)
    tk = _tile(K, k_block, 128)
    return pl.pallas_call(
        _matmul_kernel,
        out_shape=jax.ShapeDtypeStruct((M, N), x.dtype),
        grid=(M // tm, N // tn, K // tk),
        in_specs=[pl.BlockSpec((tm, tk), lambda i, j, k: (i, k)),
                  pl.BlockSpec((tk, tn), lambda i, j, k: (k, j))],
        out_specs=pl.BlockSpec((tm, tn), lambda i, j, k: (i, j)),
        scratch_shapes=[pltpu.VMEM((tm, tn), jnp.float32)],
        compiler_params=pltpu.CompilerParams(
            dimension_semantics=("parallel", "parallel", "arbitrary"),
            vmem_limit_bytes=VMEM_LIMIT),
    )(x, w)


# ---------------- fused add + RMSNorm + up_proj + relu^2 + down_proj (MLP) ----------------
def _fused_mlp_kernel(x_ref, res_ref, ln_ref, wup_ref, wdown_ref,
                      out_ref, newres_ref, h_s, acc_s, *, eps):
    k = pl.program_id(1)

    @pl.when(k == 0)
    def _():
        s = x_ref[...].astype(jnp.float32) + res_ref[...].astype(jnp.float32)
        newres_ref[...] = s.astype(newres_ref.dtype)
        var = jnp.mean(s * s, axis=-1, keepdims=True)
        h_s[...] = (s * lax.rsqrt(var + eps) * ln_ref[...]).astype(h_s.dtype)
        acc_s[...] = jnp.zeros(acc_s.shape, jnp.float32)

    a = jnp.dot(h_s[...], wup_ref[...], preferred_element_type=jnp.float32)
    a = jnp.maximum(a, 0.0)
    a = a * a                                                   # relu^2
    acc_s[...] += jnp.dot(a.astype(wdown_ref.dtype), wdown_ref[...],
                          preferred_element_type=jnp.float32)

    @pl.when(k == pl.num_programs(1) - 1)
    def _():
        out_ref[...] = acc_s[...].astype(out_ref.dtype)


def fused_mlp(x, residual, ln_w, w_up, w_down, eps, m_block=256, k_block=512):
    """(out, new_res) with new_res = x + residual, out = relu(rms(new_res)@Wup)^2 @ Wdown.
    The [S, intermediate] activation never touches HBM."""
    S, hidden = x.shape
    I = w_up.shape[1]
    tm = _tile(S, m_block, 8)
    tk = _tile(I, k_block, 128)
    return pl.pallas_call(
        functools.partial(_fused_mlp_kernel, eps=eps),
        out_shape=(jax.ShapeDtypeStruct((S, hidden), x.dtype),
                   jax.ShapeDtypeStruct((S, hidden), x.dtype)),
        grid=(S // tm, I // tk),
        in_specs=[pl.BlockSpec((tm, hidden), lambda i, k: (i, 0)),
                  pl.BlockSpec((tm, hidden), lambda i, k: (i, 0)),
                  pl.BlockSpec((1, hidden), lambda i, k: (0, 0)),
                  pl.BlockSpec((hidden, tk), lambda i, k: (0, k)),
                  pl.BlockSpec((tk, hidden), lambda i, k: (k, 0))],
        out_specs=(pl.BlockSpec((tm, hidden), lambda i, k: (i, 0)),
                   pl.BlockSpec((tm, hidden), lambda i, k: (i, 0))),
        scratch_shapes=[pltpu.VMEM((tm, hidden), x.dtype),      # normed activation
                        pltpu.VMEM((tm, hidden), jnp.float32)], # f32 accumulator
        compiler_params=pltpu.CompilerParams(
            dimension_semantics=("parallel", "arbitrary"),
            vmem_limit_bytes=VMEM_LIMIT),
    )(x, residual, ln_w.reshape(1, -1), w_up, w_down)


# ----------------------------- RoPE pre-rotation (neox style) -----------------------------
def _rope_kernel(x_ref, cos_ref, sin_ref, o_ref, *, half, scale):
    x = x_ref[...].astype(jnp.float32)
    # neox rotate_half via XLU lane-roll; the sign is folded into sin_signed.
    rot = x * cos_ref[...] + pltpu.roll(x, shift=half, axis=1) * sin_ref[...]
    o_ref[...] = (rot * scale).astype(o_ref.dtype)


def apply_rope(qkv, cos, sin_signed, head_start, num_heads_in, head_dim, scale,
               m_block=256):
    """Rotate heads [head_start, head_start+num_heads_in) of the lane-dense qkv
    slab once; returns a [S, num_heads_in*head_dim] rotated slab."""
    S = qkv.shape[0]
    D = head_dim
    tm = _tile(S, m_block, 8)
    return pl.pallas_call(
        functools.partial(_rope_kernel, half=D // 2, scale=scale),
        out_shape=jax.ShapeDtypeStruct((S, num_heads_in * D), qkv.dtype),
        grid=(S // tm, num_heads_in),
        in_specs=[pl.BlockSpec((tm, D), lambda i, h: (i, head_start + h)),
                  pl.BlockSpec((tm, D), lambda i, h: (i, 0)),
                  pl.BlockSpec((tm, D), lambda i, h: (i, 0))],
        out_specs=pl.BlockSpec((tm, D), lambda i, h: (i, h)),
        compiler_params=pltpu.CompilerParams(
            dimension_semantics=("parallel", "parallel"),
            vmem_limit_bytes=VMEM_LIMIT),
    )(qkv, cos, sin_signed)


# ---------------------- triangular flash-style causal GQA attention ----------------------
def _attn_kernel(qi_ref, ki_ref, q_ref, k_ref, v_ref, o_ref,
                 q_s, m_s, l_s, acc_s, *, group, tile, head_dim):
    p = pl.program_id(1)
    qi = qi_ref[p]
    ki = ki_ref[p]

    @pl.when(ki == 0)
    def _init():
        # Restack the (tile, group*D) q block into (group*tile, D) once per q tile.
        for g in range(group):
            q_s[g * tile:(g + 1) * tile, :] = q_ref[:, g * head_dim:(g + 1) * head_dim]
        m_s[...] = jnp.full(m_s.shape, NEG_INF, jnp.float32)
        l_s[...] = jnp.zeros(l_s.shape, jnp.float32)
        acc_s[...] = jnp.zeros(acc_s.shape, jnp.float32)

    k = k_ref[...]
    v = v_ref[...]
    # One stacked QK dot per step (q/k stay in the model dtype; f32 accumulation).
    s = lax.dot_general(q_s[...], k, (((1,), (1,)), ((), ())),
                        preferred_element_type=jnp.float32)

    # Triangular grid (ki <= qi) with tile_q == tile_kv: only the diagonal block
    # (ki == qi) needs masking, and its in-tile mask is position independent.
    row = lax.broadcasted_iota(jnp.int32, (tile, tile), 0)
    col = lax.broadcasted_iota(jnp.int32, (tile, tile), 1)
    penalty = jnp.where(col <= row, 0.0, NEG_INF).astype(jnp.float32)
    penalty = jnp.concatenate([penalty] * group, axis=0)
    s = s + penalty * (ki == qi).astype(jnp.float32)

    m_prev = m_s[...]
    m_new = jnp.maximum(m_prev, jnp.max(s, axis=-1, keepdims=True))
    alpha = jnp.exp(m_prev - m_new)
    pmat = jnp.exp(s - m_new)
    l_s[...] = alpha * l_s[...] + jnp.sum(pmat, axis=-1, keepdims=True)
    acc_s[...] = alpha * acc_s[...] + jnp.dot(pmat.astype(v.dtype), v,
                                              preferred_element_type=jnp.float32)
    m_s[...] = m_new

    # Diagonal block is always the last kv step for this q tile -> finalize.
    @pl.when(ki == qi)
    def _finalize():
        out = acc_s[...] * pl.reciprocal(l_s[...], approx=True)   # EUP, off the VALU
        for g in range(group):
            o_ref[:, g * head_dim:(g + 1) * head_dim] = (
                out[g * tile:(g + 1) * tile, :]).astype(o_ref.dtype)


def flash_attention(q_rot, k_rot, qkv, num_heads, num_kv_heads, head_dim, block=256):
    """q_rot: [S, H*D] (RoPE'd, softmax scale folded in), k_rot: [S, KV*D] (RoPE'd),
    qkv: [S, (H+2KV)*D] original slab (v is read from it). Returns [S, H*D]."""
    S = qkv.shape[0]
    H, KV, D = num_heads, num_kv_heads, head_dim
    group = H // KV          # q heads [kv*group, (kv+1)*group) are contiguous in q_rot
    t = _tile(S, block, 8)   # tile_q == tile_kv (required by the diagonal-mask trick)
    n_blk = S // t

    # Flattened triangular (qi, ki<=qi) pair tables (scalar-prefetched to SMEM).
    qi_list, ki_list = [], []
    for qi in range(n_blk):
        for ki in range(qi + 1):
            qi_list.append(qi)
            ki_list.append(ki)
    qi_tab = jnp.asarray(qi_list, jnp.int32)
    ki_tab = jnp.asarray(ki_list, jnp.int32)

    kernel = functools.partial(_attn_kernel, group=group, tile=t, head_dim=D)
    grid_spec = pltpu.PrefetchScalarGridSpec(
        num_scalar_prefetch=2,
        grid=(KV, len(qi_list)),
        in_specs=[
            pl.BlockSpec((t, group * D), lambda kv, p, qt, kt: (qt[p], kv)),
            pl.BlockSpec((t, D), lambda kv, p, qt, kt: (kt[p], kv)),
            pl.BlockSpec((t, D), lambda kv, p, qt, kt: (kt[p], H + KV + kv)),
        ],
        out_specs=pl.BlockSpec((t, group * D), lambda kv, p, qt, kt: (qt[p], kv)),
        scratch_shapes=[
            pltpu.VMEM((group * t, D), qkv.dtype),     # stacked q (model dtype)
            pltpu.VMEM((group * t, 1), jnp.float32),   # running max
            pltpu.VMEM((group * t, 1), jnp.float32),   # running sum
            pltpu.VMEM((group * t, D), jnp.float32),   # running output
        ])
    return pl.pallas_call(
        kernel,
        out_shape=jax.ShapeDtypeStruct((S, H * D), qkv.dtype),
        grid_spec=grid_spec,
        # Leading KV axis is "parallel" -> shards across the two v7x TensorCores.
        compiler_params=pltpu.CompilerParams(
            dimension_semantics=("parallel", "arbitrary"),
            vmem_limit_bytes=VMEM_LIMIT),
    )(qi_tab, ki_tab, q_rot, k_rot, qkv)


# ----------------------------------- rope cache (host glue) -----------------------------------
def make_rope_cache(positions, head_dim, theta):
    inv_freq = 1.0 / (theta ** (jnp.arange(0, head_dim, 2, dtype=jnp.float32) / head_dim))
    ang = positions.astype(jnp.float32)[:, None] * inv_freq[None, :]
    cos = jnp.cos(ang)
    sin = jnp.sin(ang)
    cos_full = jnp.concatenate([cos, cos], axis=-1)
    # sign of rotate_half folded into the sin cache: rot_half(x)*sin == roll(x,D/2)*sin_signed
    sin_signed = jnp.concatenate([-sin, sin], axis=-1)
    return cos_full, sin_signed


# --------------------------------- decoder layer forward ---------------------------------
def arcee_decoder_layer(positions, hidden_states, params, residual=None):
    H, KV, D = params["num_heads"], params["num_kv_heads"], params["head_dim"]
    assert H % KV == 0, "GQA requires num_heads % num_kv_heads == 0"
    eps = params["eps"]
    scale = D ** -0.5

    cos, sin_signed = make_rope_cache(positions, D, params["rope_theta"])

    # input RMSNorm (+ optional fused residual add) fused into the QKV projection
    qkv, residual = fused_norm_matmul(hidden_states, params["input_ln"],
                                      params["w_qkv"], eps, residual=residual)

    # RoPE applied ONCE to q (scale folded in) and k; attention never touches cos/sin.
    q_rot = apply_rope(qkv, cos, sin_signed, head_start=0, num_heads_in=H,
                       head_dim=D, scale=scale)
    k_rot = apply_rope(qkv, cos, sin_signed, head_start=H, num_heads_in=KV,
                       head_dim=D, scale=1.0)

    # triangular flash-style causal GQA attention
    attn = flash_attention(q_rot, k_rot, qkv, H, KV, D)

    # O projection (tiled, pipelined)
    # TODO(synk): consider folding W_o into the attention epilogue / MLP prologue to
    #             drop the [S, H*D] HBM round trip (biggest relative win on v5e).
    attn_o = matmul(attn, params["w_o"])

    # post-attention add+RMSNorm fused with the relu^2 MLP
    out, residual = fused_mlp(attn_o, residual, params["post_ln"],
                              params["w_up"], params["w_down"], eps)
    return out, residual


# --------------------------------------- reference ---------------------------------------
def _ref_layer(positions, hidden_states, params, residual=None):
    HP = lax.Precision.HIGHEST
    H, KV, D = params["num_heads"], params["num_kv_heads"], params["head_dim"]
    eps = params["eps"]
    S = hidden_states.shape[0]

    def rms(x, w):
        var = jnp.mean(x * x, axis=-1, keepdims=True)
        return x * lax.rsqrt(var + eps) * w

    if residual is None:
        residual = hidden_states
        h = rms(hidden_states, params["input_ln"])
    else:
        residual = hidden_states + residual
        h = rms(residual, params["input_ln"])

    qkv = jnp.dot(h, params["w_qkv"], precision=HP)
    q_size, kv_size = H * D, KV * D
    q = qkv[:, :q_size].reshape(S, H, D)
    k = qkv[:, q_size:q_size + kv_size].reshape(S, KV, D)
    v = qkv[:, q_size + kv_size:].reshape(S, KV, D)

    half = D // 2
    inv_freq = 1.0 / (params["rope_theta"] **
                      (jnp.arange(0, D, 2, dtype=jnp.float32) / D))
    ang = positions.astype(jnp.float32)[:, None] * inv_freq[None, :]
    cos = jnp.concatenate([jnp.cos(ang)] * 2, -1)[:, None, :]
    sin = jnp.concatenate([jnp.sin(ang)] * 2, -1)[:, None, :]

    def rope(x):
        rot_half = jnp.concatenate([-x[..., half:], x[..., :half]], -1)
        return x * cos + rot_half * sin

    q, k = rope(q), rope(k)
    k = jnp.repeat(k, H // KV, axis=1)
    v = jnp.repeat(v, H // KV, axis=1)
    s = jnp.einsum("qhd,khd->hqk", q, k, precision=HP) * (D ** -0.5)
    mask = jnp.tril(jnp.ones((S, S), bool))
    s = jnp.where(mask[None], s, NEG_INF)
    p = jax.nn.softmax(s, axis=-1)
    o = jnp.einsum("hqk,khd->qhd", p, v, precision=HP).reshape(S, H * D)
    o = jnp.dot(o, params["w_o"], precision=HP)

    residual = o + residual
    h2 = rms(residual, params["post_ln"])
    up = jnp.dot(h2, params["w_up"], precision=HP)
    up = jnp.maximum(up, 0.0) ** 2
    out = jnp.dot(up, params["w_down"], precision=HP)
    return out, residual


# ------------------------------------------- main -------------------------------------------
if __name__ == "__main__":
    S = 8
    num_heads, num_kv_heads, head_dim = 4, 2, 128     # realistic head_dim (lane-aligned)
    hidden = num_heads * head_dim                      # 512
    intermediate = 1024

    key = jax.random.PRNGKey(0)
    ks = jax.random.split(key, 7)
    sc = 0.05
    params = dict(
        num_heads=num_heads,
        num_kv_heads=num_kv_heads,
        head_dim=head_dim,
        eps=1e-6,
        rope_theta=10000.0,
        w_qkv=sc * jax.random.normal(
            ks[0], (hidden, (num_heads + 2 * num_kv_heads) * head_dim), jnp.float32),
        w_o=sc * jax.random.normal(ks[1], (num_heads * head_dim, hidden), jnp.float32),
        w_up=sc * jax.random.normal(ks[2], (hidden, intermediate), jnp.float32),
        w_down=sc * jax.random.normal(ks[3], (intermediate, hidden), jnp.float32),
        input_ln=1.0 + 0.1 * jax.random.normal(ks[4], (hidden,), jnp.float32),
        post_ln=1.0 + 0.1 * jax.random.normal(ks[5], (hidden,), jnp.float32),
    )

    positions = jnp.arange(S, dtype=jnp.int32)
    hidden_states = jax.random.normal(ks[6], (S, hidden), jnp.float32)

    # layer 1: residual=None path
    out1, res1 = arcee_decoder_layer(positions, hidden_states, params, residual=None)
    out1 = jax.block_until_ready(out1)
    res1 = jax.block_until_ready(res1)
    # layer 2: fused add+norm residual path (same inputs to kernel and reference)
    out2, res2 = arcee_decoder_layer(positions, out1, params, residual=res1)
    out2 = jax.block_until_ready(out2)
    res2 = jax.block_until_ready(res2)

    ref_out1, ref_res1 = _ref_layer(positions, hidden_states, params, residual=None)
    ref_out2, ref_res2 = _ref_layer(positions, out1, params, residual=res1)

    for got, ref, name in [(out1, ref_out1, "out1"), (res1, ref_res1, "res1"),
                           (out2, ref_out2, "out2"), (res2, ref_res2, "res2")]:
        assert got.shape == (S, hidden), name
        assert bool(jnp.all(jnp.isfinite(got))), name
        assert bool(jnp.allclose(got, ref, rtol=2e-2, atol=1e-2)), f"{name} mismatch"

    print("KERNEL_OK")
</pallas_src>

<mosaic_0001>
module attributes {stable_mosaic.version = 11 : i64} {
  func.func @_norm_matmul_kernel(%arg0: i32, %arg1: i32, %arg2: memref<8x512xf32, #tpu.memory_space<vmem>>, %arg3: memref<1x512xf32, #tpu.memory_space<vmem>>, %arg4: memref<512x512xf32, #tpu.memory_space<vmem>>, %arg5: memref<8x512xf32, #tpu.memory_space<vmem>>, %arg6: memref<8x512xf32, #tpu.memory_space<vmem>>, %arg7: memref<8x512xf32, #tpu.memory_space<vmem>>) attributes {dimension_semantics = [#tpu.dimension_semantics<parallel>, #tpu.dimension_semantics<arbitrary>], iteration_bounds = array<i64: 1, 2>, scalar_prefetch = 0 : i64, scratch_operands = 1 : i64, tpu.core_type = #tpu.core_type<tc>, window_params = [{transform_indices = @transform_0, window_bounds = array<i64: 8, 512>}, {pipeline_mode = #tpu.pipeline_mode<synchronous>, transform_indices = @transform_1, window_bounds = array<i64: 1, 512>}, {transform_indices = @transform_2, window_bounds = array<i64: 512, 512>}, {transform_indices = @transform_3, window_bounds = array<i64: 8, 512>}, {transform_indices = @transform_4, window_bounds = array<i64: 8, 512>}]} {
    %c0_i32 = arith.constant 0 : i32
    %0 = arith.cmpi eq, %arg1, %c0_i32 : i32
    %1 = arith.extui %0 : i1 to i32
    %c0_i32_0 = arith.constant 0 : i32
    %2 = arith.cmpi ne, %1, %c0_i32_0 : i32
    scf.if %2 {
      %c0_6 = arith.constant 0 : index
      %c0_7 = arith.constant 0 : index
      %7 = vector.load %arg2[%c0_6, %c0_7] : memref<8x512xf32, #tpu.memory_space<vmem>>, vector<8x512xf32>
      %c0_8 = arith.constant 0 : index
      %c0_9 = arith.constant 0 : index
      %8 = vector.load %arg6[%c0_8, %c0_9] : memref<8x512xf32, #tpu.memory_space<vmem>>, vector<8x512xf32>
      tpu.vector_store %arg6[%c0_8, %c0_9], %7 {strides = array<i32>} : memref<8x512xf32, #tpu.memory_space<vmem>>, vector<8x512xf32>,
      %9 = arith.mulf %7, %7 : vector<8x512xf32>
      %cst_10 = arith.constant dense<0.000000e+00> : vector<8xf32>
      %10 = vector.multi_reduction <add>, %9, %cst_10 [1] : vector<8x512xf32> to vector<8xf32>
      %11 = vector.shape_cast %10 : vector<8xf32> to vector<8x1xf32>
      %cst_11 = arith.constant 5.120000e+02 : f32
      %12 = vector.broadcast %cst_11 : f32 to vector<8x1xf32>
      %13 = arith.divf %11, %12 : vector<8x1xf32>
      %cst_12 = arith.constant 9.99999997E-7 : f32
      %14 = vector.broadcast %cst_12 : f32 to vector<8x1xf32>
      %15 = arith.addf %13, %14 : vector<8x1xf32>
      %16 = math.rsqrt %15 : vector<8x1xf32>
      %17 = vector.broadcast %16 : vector<8x1xf32> to vector<8x512xf32>
      %18 = arith.mulf %7, %17 : vector<8x512xf32>
      %c0_13 = arith.constant 0 : index
      %c0_14 = arith.constant 0 : index
      %19 = vector.load %arg3[%c0_13, %c0_14] : memref<1x512xf32, #tpu.memory_space<vmem>>, vector<1x512xf32>
      %20 = vector.broadcast %19 : vector<1x512xf32> to vector<8x512xf32>
      %21 = arith.mulf %18, %20 : vector<8x512xf32>
      %c0_15 = arith.constant 0 : index
      %c0_16 = arith.constant 0 : index
      %22 = vector.load %arg7[%c0_15, %c0_16] : memref<8x512xf32, #tpu.memory_space<vmem>>, vector<8x512xf32>
      tpu.vector_store %arg7[%c0_15, %c0_16], %21 {strides = array<i32>} : memref<8x512xf32, #tpu.memory_space<vmem>>, vector<8x512xf32>,
    } else {
    }
    %c0 = arith.constant 0 : index
    %c0_1 = arith.constant 0 : index
    %3 = vector.load %arg7[%c0, %c0_1] : memref<8x512xf32, #tpu.memory_space<vmem>>, vector<8x512xf32>
    %c0_2 = arith.constant 0 : index
    %c0_3 = arith.constant 0 : index
    %4 = vector.load %arg4[%c0_2, %c0_3] : memref<512x512xf32, #tpu.memory_space<vmem>>, vector<512x512xf32>
    %cst = arith.constant dense<0.000000e+00> : vector<8x512xf32>
    %5 = tpu.matmul %3, %4, %cst {dimension_numbers = #tpu.dot_dimension_numbers<[1], [0], [0], [1], [0, 0, 1, 1], [], []>} : vector<8x512xf32>, vector<512x512xf32>, vector<8x512xf32> -> vector<8x512xf32>
    %c0_4 = arith.constant 0 : index
    %c0_5 = arith.constant 0 : index
    %6 = vector.load %arg5[%c0_4, %c0_5] : memref<8x512xf32, #tpu.memory_space<vmem>>, vector<8x512xf32>
    tpu.vector_store %arg5[%c0_4, %c0_5], %5 {strides = array<i32>} : memref<8x512xf32, #tpu.memory_space<vmem>>, vector<8x512xf32>,
    return
  }
  func.func @transform_0(%arg0: i32, %arg1: i32) -> (i32, i32) {
    %c0_i32 = arith.constant 0 : i32
    %c0_i32_0 = arith.constant 0 : i32
    return %arg0, %c0_i32 : i32, i32
  }
  func.func @transform_1(%arg0: i32, %arg1: i32) -> (i32, i32) {
    %c0_i32 = arith.constant 0 : i32
    %c0_i32_0 = arith.constant 0 : i32
    %c0_i32_1 = arith.constant 0 : i32
    return %c0_i32, %c0_i32_0 : i32, i32
  }
  func.func @transform_2(%arg0: i32, %arg1: i32) -> (i32, i32) {
    %c0_i32 = arith.constant 0 : i32
    %c0_i32_0 = arith.constant 0 : i32
    return %c0_i32, %arg1 : i32, i32
  }
  func.func @transform_3(%arg0: i32, %arg1: i32) -> (i32, i32) {
    %c0_i32 = arith.constant 0 : i32
    return %arg0, %arg1 : i32, i32
  }
  func.func @transform_4(%arg0: i32, %arg1: i32) -> (i32, i32) {
    %c0_i32 = arith.constant 0 : i32
    %c0_i32_0 = arith.constant 0 : i32
    return %arg0, %c0_i32 : i32, i32
  }
}

</mosaic_0001>

<bundles_post_ra>
// kernel: tpu_custom_call.1
= control target key start
LH: loop header
LB: loop body
LE: loop exit
PB: predicated region body
PF: predicated region fallthrough
CT: control target
= control target key end

     0   :  { %10 = vsyncpa [#allocation4], 0  ;;  %s2182_s0 = inlined_call_operand.hbm [shape: f32[8,512], index: 0, kind: input, shape index: {}]   ;;  %s2183_s1 = inlined_call_operand.hbm [shape: f32[1,512], index: 1, kind: input, shape index: {}]   ;;  %s2184_s2 = inlined_call_operand.hbm [shape: f32[512,1024], index: 2, kind: input, shape index: {}]   ;;  %s2185_s3 = inlined_call_operand.hbm [shape: f32[8,1024], index: 3, kind: output, shape index: {0}]   ;;  %s2186_s4 = inlined_call_operand.hbm [shape: f32[8,512], index: 4, kind: output, shape index: {1}]  }
   0x1   :  { %11 = vsyncpa [#allocation7], 0 }
   0x2   :  { %12 = vsyncpa [#allocation5], 0 }
   0x3   :  { %14 = vsyncpa [#allocation5 + $0x1], 0 }
   0x4   :  { %15 = vsyncpa [#allocation11], 0  ;;  %s1640_s15 = smov 0   ;;  %s1642_s16 = smov 0  }
   0x5   :  { %s1644_s17 = smov 0   ;;  %s1646_s18 = smov 0  }
   0x6   :  { %s1648_s19 = smov 0   ;;  %s1650_s20 = smov 0  }
   0x7 LB: > { %s1671_s21 = sadd.s32 4294967295, %s1605_s20   ;;  %s1021_s22 = sadd.s32 4294967294, %s1605_s20   ;;  %s1605_s20 = sphi %s1650_s20, %s21_s20   ;;  %s1601_s19 = sphi %s1648_s19, %s2219_s19   ;;  %s1597_s18 = sphi %s1646_s18, %s2218_s18   ;;  %s1593_s17 = sphi %s1644_s17, %s2217_s17   ;;  %s1589_s16 = sphi %s1642_s16, %s2216_s16   ;;  %s1585_s15 = sphi %s1640_s15, %s2215_s15  }
   0x8   : > { %s87_s23 = sadd.s32 1, %s1593_s17  ;;  %p94_p0 = scmp.ne.s32.totalorder %s1593_s17, %s1589_s16 }
   0x9   : > { %p95_p1 = scmp.eq.s32.totalorder %s1605_s20, 0  ;;  %p100_p2 = scmp.ne.s32.totalorder %s1589_s16, %s1585_s15 }
   0xa   : > { %p2188_p3 = scmp.eq.s32.totalorder %s1671_s21, 0  ;;  %p2187_p4 = scmp.eq.s32.totalorder %s1671_s21, 1 }
   0xb   : > { %p1682_p5 = por %p95_p1, %p94_p0  ;;  %p132_p6 = scmp.eq.s32.totalorder %s1021_s22, 1 }
   0xc   : > { %p1688_p7 = por %p2188_p3, %p100_p2  ;;  %p1694_p8 = por %p2187_p4, %p94_p0 }
   0xd   : > { %p1698_p9 = por %p132_p6, %p100_p2  ;;  %p1022_p10 = scmp.ge.s32.totalorder %s1605_s20, 1 }
   0xe   : > { %s2194_s25 = scalar_select %p1688_p7, 1, 0 }
   0xf   : > { %s2195_s26 = scalar_select %p1694_p8, 1, 0 }
  0x10   : > { %s2196_s27 = scalar_select %p1698_p9, 1, 0 }
  0x11   : > { %p165_p11 = scmp.lt.s32.totalorder %s1605_s20, 3  ;;  %s1607_s29 = smov [#allocation3]  }
  0x12   : > { %s181_s30 = sshll.u32 %s1607_s29, 4  ;;  %p1337_p1 = scmp.lt.s32.totalorder %s1605_s20, 2  ;;  %s182_s30 = int_to_ptr.vmem [resolvable:$true] %s181_s30 }
  0x13   : > { %p1705_p13 = pnand %p1022_p10, %p165_p11  ;;  %s1608_s6 = smov [#allocation6]  }
  0x14   : > { %p1714_p4 = pnand %p1337_p1, %p1682_p5  ;;  %s192_s7 = sshll.u32 %s1608_s6, 4  ;;  %s1724_s7 = int_to_ptr.vmem [resolvable:$true] %s192_s7 }
  0x15   : > { %s2197_s28 = scalar_select %p1705_p13, 1, 0 }
  0x16   : > { %p1320_p0 = pneg %p1705_p13  ;;  %s1399_s11 = scalar_lea.hbm %s2182_s0, 512 }
  0x17   : > { %s2198_s5 = scalar_select %p1714_p4, 1, 0 }
  0x18   : > { %p1720_p2 = pnand %p1320_p0, %p2188_p3  ;;  %p1400_p5 = scmp.ne.s32.totalorder %s2182_s0, %s1399_s11 }
  0x19   : > { %p1406_p1 = scmp.lt.u32.totalorder %s1399_s11, %s2182_s0 }
  0x1a   : > { %p1401_p6 = pneg %p1720_p2 }
  0x1c   : > { %p1402_p10 = pnand %p1401_p6, %p1400_p5 }
  0x1e   : > { %p1403_p11 = pneg %p1402_p10 }
  0x20   : > { %p1408_p0 = pnand %p1406_p1, %p1403_p11 }
  0x22   : > { %1411 = shalt.err (!%p1408_p0)
}
  0x23   : > { %s1412_s24 = scalar_lea.vmem %s182_s30, 512  ;;  %p1420_p8 = scmp.lt.s32.totalorder %s182_s30, %s182_s30 }
  0x24   : > { %p1413_p12 = scmp.ne.s32.totalorder %s182_s30, %s1412_s24  ;;  %p1421_p7 = scmp.lt.s32.totalorder %s1412_s24, %s1412_s24 }
  0x26   : > { %p1415_p3 = pnand %p1413_p12, %p1401_p6  ;;  %p1422_p13 = por %p1421_p7, %p1420_p8 }
  0x28   : > { %p1416_p9 = pneg %p1415_p3 }
  0x2a   : > { %p1423_p4 = pnand %p1422_p13, %p1416_p9 }
  0x2c   : > { %1426 = shalt.err (!%p1423_p4)
}
  0x2d   : > { %1323 = dma.hbm_to_vmem [thread:$0]  (!%p1720_p2), %s2182_s0, 512, %s182_s30, [#allocation4]  }
  0x2e   : > { %s1427_s11 = scalar_lea.hbm %s2183_s1, 64 }
  0x2f   : > { %p1428_p3 = scmp.ne.s32.totalorder %s2183_s1, %s1427_s11  ;;  %p1434_p4 = scmp.lt.u32.totalorder %s1427_s11, %s2183_s1 }
  0x31   : > { %p1430_p7 = pnand %p1428_p3, %p1401_p6 }
  0x33   : > { %p1431_p8 = pneg %p1430_p7 }
  0x35   : > { %p1436_p9 = pnand %p1434_p4, %p1431_p8 }
  0x37   : > { %1439 = shalt.err (!%p1436_p9)
}
  0x38   : > { %s1440_s30 = scalar_lea.vmem %s1724_s7, 64  ;;  %p1448_p10 = scmp.lt.s32.totalorder %s1724_s7, %s1724_s7 }
  0x39   : > { %p1441_p12 = scmp.ne.s32.totalorder %s1724_s7, %s1440_s30  ;;  %p1449_p11 = scmp.lt.s32.totalorder %s1440_s30, %s1440_s30 }
  0x3b   : > { %p1443_p13 = pnand %p1441_p12, %p1401_p6  ;;  %p1450_p1 = por %p1449_p11, %p1448_p10 }
  0x3d   : > { %p1444_p5 = pneg %p1443_p13 }
  0x3f   : > { %p1451_p0 = pnand %p1450_p1, %p1444_p5 }
  0x41   : > { %1454 = shalt.err (!%p1451_p0)
}
  0x42   : > { %1326 = dma.hbm_to_vmem [thread:$0]  (!%p1720_p2), %s2183_s1, 64, %s1724_s7, [#allocation7]  }
  0x43   : > { %s30_s6 = sadd.s32 1, %s1601_s19  ;;  %s203_s9 = sand.u32 1, %s1605_s20  }
  0x44   : > { %p31_p6 = scmp.ge.s32.totalorder %s30_s6, 2  ;;  %s205_s10 = sand.u32 1, %s1593_s17  }
  0x45   : > { %s1042_s11 = sshll.u32 %s1601_s19, 9  ;;  %s1026_s8 = sshll.u32 %s205_s10, 11 }
  0x46   : > { %s2221_s6 = smov (%p31_p6, %s30_s6), 0  ;;  %s1782_s14 = scalar_lea.hbm %s2184_s2, %s1042_s11 }
  0x47   : > { %s84_s7 = ssub.s32 %s1601_s19, %s2221_s6  ;;  %s207_s22 = scalar_lea.vmem [#allocation8], %s1026_s8 }
  0x48   : > { %p85_p2 = scmp.eq.s32.totalorder %s84_s7, 0  ;;  %s214_s30 = sshll.u32 %s207_s22, 4  ;;  %s1786_s30 = int_to_ptr.vmem [resolvable:$true] %s214_s30 }
  0x49   : > { %s1793_s29 = scalar_lea.sflag [#allocation4], %s203_s9  ;;  %s1455_s10 = scalar_lea.hbm %s1782_s14, 32768 }
  0x4a   : > { %s1791_s24 = scalar_select %p85_p2, %s1593_s17, %s87_s23  }
  0x4b   : > { %p1456_p3 = scmp.ne.s32.totalorder %s1782_s14, %s1455_s10  ;;  %p2200_p7 = scmp.ne.s32.totalorder %s2198_s5, 0 }
  0x4c   : > { %s1460_s8 = scalar_lea.hbm %s2184_s2, 65536  ;;  %p1461_p12 = scmp.lt.u32.totalorder %s1782_s14, %s2184_s2 }
  0x4d   : > { %p1457_p8 = pneg %p2200_p7  ;;  %p1462_p13 = scmp.lt.u32.totalorder %s1460_s8, %s1455_s10 }
  0x4e   : > { %p1464_p10 = scmp.lt.u32.totalorder %s1455_s10, %s1782_s14 }
  0x4f   : > { %p1458_p4 = pnand %p1457_p8, %p1456_p3  ;;  %p1463_p5 = por %p1462_p13, %p1461_p12 }
  0x51   : > { %p1459_p9 = pneg %p1458_p4  ;;  %p1465_p11 = por %p1464_p10, %p1463_p5 }
  0x53   : > { %p1466_p1 = pnand %p1465_p11, %p1459_p9 }
  0x55   : > { %1469 = shalt.err (!%p1466_p1)
}
  0x56   : > { %s1470_s23 = scalar_lea.vmem %s1786_s30, 32768  ;;  %s1609_s9 = smov [#allocation8]  }
  0x57   : > { %p1471_p0 = scmp.ne.s32.totalorder %s1786_s30, %s1470_s23  ;;  %s1475_s22 = sshll.u32 %s1609_s9, 4  ;;  %s1476_s22 = int_to_ptr.vmem [resolvable:$false] %s1475_s22 }
  0x58   : > { %s1477_s11 = scalar_lea.vmem %s1476_s22, 65536  ;;  %p1478_p3 = scmp.lt.s32.totalorder %s1786_s30, %s1476_s22 }
  0x59   : > { %p1473_p6 = pnand %p1471_p0, %p1457_p8  ;;  %p1479_p4 = scmp.lt.s32.totalorder %s1477_s11, %s1470_s23 }
  0x5b   : > { %p1474_p2 = pneg %p1473_p6  ;;  %p1480_p12 = por %p1479_p4, %p1478_p3 }
  0x5d   : > { %p1481_p13 = pnand %p1480_p12, %p1474_p2 }
  0x5f   : > { %1484 = shalt.err (!%p1481_p13)
}
  0x60   : > { %s1610_s10 = smov 1024   ;;  %s1611_s12 = smov 512  }
  0x61   : > { %s1612_s8 = smov 32   ;;  %p2201_p8 = scmp.ne.s32.totalorder %s2197_s28, 0 }
  0x62   : > { %1330 = dma.hbm_to_vmem [thread:$0]  (!%p2200_p7), %s1782_s14, 32768, %s1786_s30, %s1793_s29, %s1610_s10, %s1611_s12, %s1612_s8  }
  0x63   : > { %226 = sbr.rel (%p2201_p8) target bundleno = 654 (0x28e), region = 32  ;;  %p2202_p9 = scmp.eq.s32.totalorder (!%p2201_p8), %s1671_s21, 0 }
  0x6a   : > { %1564 = dma.done.wait (%p2202_p9), [#allocation4], 512   ;;  %p2203_p5 = pmov %p2202_p9 }
  0x6c   : > { %1566 = vsyncadd (%p2203_p5), [#allocation4], 4294966784  ;;  %p2204_p10 = pmov %p2203_p5 }
  0x6d   : > { %p2205_p11 = pmov %p2203_p5 }
  0x6e   : > { %1568 = dma.done.wait (%p2204_p10), [#allocation7], 64  }
  0x6f   : > { %1570 = vsyncadd (%p2205_p11), [#allocation7], 4294967232  ;;  %s236_s5 = sand.u32 1, %s1671_s21   ;;  %s1833_s14 = sand.u32 1, %s1589_s16  }
  0x70   : > { %s1032_s28 = sshll.u32 %s1833_s14, 11  ;;  %s237_s30 = scalar_lea.sflag [#allocation4], %s236_s5 }
  0x71   : > { %s1836_s29 = scalar_lea.vmem [#allocation8], %s1032_s28  ;;  %p2206_p7 = scmp.ne.s32.totalorder %s2194_s25, 0 }
  0x73   : > { %1572 = dma.done.wait (%p2206_p7), %s237_s30, 32768  }
  0x74   : > { %1574 = vsyncadd (%p2206_p7), %s237_s30, 4294934528  ;;  %s1033_s13 = sshll.u32 %s1833_s14, 5  ;;  %p1034_p1 = scmp.ne.s32.totalorder %s1597_s18, 0 }
  0x75   : > { %s1843_s7 = scalar_lea.vmem [#allocation9], %s1033_s13  ;;  %v271_v0 = vld [vmem:[#allocation3] sm:$0xff] (!%p1034_p1)  ;;  %v272_v1 = vld [vmem:[#allocation3 + $0x8] sm:$0xff] (!%p1034_p1)  ;;  %v273_v2 = vld [vmem:[#allocation3 + $0x10] sm:$0xff] (!%p1034_p1)  ;;  %v298_v13 = vlaneseq (!%p1034_p1) }
  0x76   : > { %270 = sbr.rel (%p1034_p1) target bundleno = 289 (0x121), region = 48  ;;  %v274_v3 = vld [vmem:[#allocation3 + $0x18] sm:$0xff] (!%p1034_p1)  ;;  %275 = vst [vmem:[#allocation10] sm:$0xff] (!%p1034_p1), %v271_v0  ;;  %276 = vst [vmem:[#allocation10 + $0x8] sm:$0xff] (!%p1034_p1), %v272_v1  ;;  %v279_v4 = vmul.f32 (!%p1034_p1), %v271_v0, %v271_v0  ;;  %v280_v5 = vmul.f32 (!%p1034_p1), %v272_v1, %v272_v1  ;;  %v281_v6 = vmul.f32 (!%p1034_p1), %v273_v2, %v273_v2  ;;  %v296_v20 = vld [vmem:[#allocation6] sm:$0xf] (!%p1034_p1) }
  0x77   : > { %277 = vst [vmem:[#allocation10 + $0x10] sm:$0xff] (!%p1034_p1), %v273_v2  ;;  %278 = vst [vmem:[#allocation10 + $0x18] sm:$0xff] (!%p1034_p1), %v274_v3  ;;  %v282_v7 = vmul.f32 (!%p1034_p1), %v274_v3, %v274_v3  ;;  %v299_v15 = vshrl.u32 (!%p1034_p1), %v298_v13, 7 }
  0x78   : > { %v283_v8 = vadd.f32 (!%p1034_p1), %v280_v5, %v279_v4 }
  0x79   : > { %v300_v16 = vsub.s32 (!%p1034_p1), 0, %v299_v15  ;;  %v304_v17 = vsub.s32 (!%p1034_p1), 1, %v299_v15  ;;  %v308_v18 = vsub.s32 (!%p1034_p1), 2, %v299_v15  ;;  %v312_v19 = vsub.s32 (!%p1034_p1), 3, %v299_v15 }
  0x7a   : > { %v284_v9 = vadd.f32 (!%p1034_p1), %v283_v8, %v281_v6 }
  0x7b   : > { %v301_v21 = vrot.slane (!%p1034_p1), %v296_v20, %v300_v16  ;;  %v305_v22 = vrot.slane (!%p1034_p1), %v296_v20, %v304_v17  ;;  %v309_v23 = vrot.slane (!%p1034_p1), %v296_v20, %v308_v18  ;;  %v313_v24 = vrot.slane (!%p1034_p1), %v296_v20, %v312_v19 }
  0x7c   : > { %v285_v10 = vadd.f32 (!%p1034_p1), %v284_v9, %v282_v7 }
  0x7e   : > { %286 = vadd.xlane.f32.xlu0 %v285_v10 }
 0x10b   : > { %v287_v11 = vpop.xlane.xlu0 %286 }
 0x10c   : > { %v289_v12 = vmul.f32 0.001953125, %v287_v11 }
 0x10e   : > { %v290_v14 = vadd.f32 1e-06, %v289_v12 }
 0x110   : > { %1397 = vrsqrt.f32 %v290_v14 }
 0x11a   : > { %v1398_v25 = vpop.eup %1397 }
 0x11b   : > { %v292_v26 = vmul.f32 %v1398_v25, %v271_v0  ;;  %v293_v27 = vmul.f32 %v1398_v25, %v272_v1  ;;  %v294_v28 = vmul.f32 %v1398_v25, %v273_v2  ;;  %v295_v29 = vmul.f32 %v1398_v25, %v274_v3 }
 0x11d   : > { %v318_v30 = vmul.f32 %v301_v21, %v292_v26  ;;  %v319_v31 = vmul.f32 %v305_v22, %v293_v27  ;;  %v320_v32 = vmul.f32 %v309_v23, %v294_v28  ;;  %v321_v33 = vmul.f32 %v313_v24, %v295_v29 }
 0x11f   : > { %322 = vst [vmem:[#allocation2] sm:$0xff] %v318_v30  ;;  %323 = vst [vmem:[#allocation2 + $0x8] sm:$0xff] %v319_v31 }
 0x120   : > { %324 = vst [vmem:[#allocation2 + $0x10] sm:$0xff] %v320_v32  ;;  %325 = vst [vmem:[#allocation2 + $0x18] sm:$0xff] %v321_v33 }
 0x121 PF: > { %v331_v34 = vld [vmem:[%s1836_s29 + $0x8] sm:$0xff]  ;;  %v333_v36 = vld [vmem:[%s1836_s29 + $0x18] sm:$0xff]  ;;  %v330_v39 = vld [vmem:[%s1836_s29] sm:$0xff]  ;;  %s1613_s25 = smov [#allocation10]   ;;  %p2207_p6 = scmp.eq.s32.totalorder %s1671_s21, 1 }
 0x122   : > { %v335_v35 = vld [vmem:[%s1836_s29 + $0x28] sm:$0xff]  ;;  %v337_v38 = vld [vmem:[%s1836_s29 + $0x38] sm:$0xff]  ;;  %v334_v40 = vld [vmem:[%s1836_s29 + $0x20] sm:$0xff]  ;;  %s905_s23 = sshll.u32 %s1613_s25, 4  ;;  %s906_s23 = int_to_ptr.vmem [resolvable:$true] %s905_s23 }
 0x123   : > { %v1044_v37 = vpack.c.bf16 %v335_v35, %v331_v34  ;;  %v1172_v41 = vpack.c.bf16 %v337_v38, %v333_v36  ;;  %v1046_v42 = vpack.c.bf16 %v334_v40, %v330_v39  ;;  %v332_v43 = vld [vmem:[%s1836_s29 + $0x10] sm:$0xff]  ;;  %v339_v45 = vld [vmem:[%s1836_s29 + $0x48] sm:$0xff]  ;;  %v341_v48 = vld [vmem:[%s1836_s29 + $0x58] sm:$0xff]  ;;  %s1485_s9 = scalar_lea.vmem %s906_s23, 512  ;;  %p1492_p4 = scmp.lt.s32.totalorder %s906_s23, %s906_s23 }
 0x124   : > { %v336_v44 = vld [vmem:[%s1836_s29 + $0x30] sm:$0xff]  ;;  %v343_v47 = vld [vmem:[%s1836_s29 + $0x68] sm:$0xff]  ;;  %v345_v49 = vld [vmem:[%s1836_s29 + $0x78] sm:$0xff]  ;;  %p1486_p0 = scmp.ne.s32.totalorder %s906_s23, %s1485_s9  ;;  %p1493_p12 = scmp.lt.s32.totalorder %s1485_s9, %s1485_s9 }
 0x125   : > { %1045 = vmatprep.subr.bf16.mxu0 %v1044_v37  ;;  %v1174_v46 = vpack.c.bf16 %v336_v44, %v332_v43  ;;  %1173 = vmatprep.subr.bf16.mxu1 %v1172_v41  ;;  %v1048_v50 = vpack.c.bf16 %v343_v47, %v339_v45  ;;  %v1176_v51 = vpack.c.bf16 %v345_v49, %v341_v48  ;;  %v338_v52 = vld [vmem:[%s1836_s29 + $0x40] sm:$0xff]  ;;  %v340_v54 = vld [vmem:[%s1836_s29 + $0x50] sm:$0xff]  ;;  %v347_v57 = vld [vmem:[%s1836_s29 + $0x88] sm:$0xff] }
 0x126   : > { %1047 = vmatpush1.bf16.msra.mxu0 %v1046_v42  ;;  %v342_v53 = vld [vmem:[%s1836_s29 + $0x60] sm:$0xff]  ;;  %v344_v56 = vld [vmem:[%s1836_s29 + $0x70] sm:$0xff]  ;;  %v351_v58 = vld [vmem:[%s1836_s29 + $0xa8] sm:$0xff]  ;;  %p1487_p2 = pnand %p1486_p0, %p2207_p6  ;;  %p1494_p13 = por %p1493_p12, %p1492_p4 }
 0x127   : > { %1175 = vmatpush1.bf16.msra.mxu1 %v1174_v46  ;;  %v1050_v55 = vpack.c.bf16 %v342_v53, %v338_v52  ;;  %1049 = vmatprep.subr.bf16.mxu0 %v1048_v50  ;;  %v1178_v59 = vpack.c.bf16 %v344_v56, %v340_v54  ;;  %v1052_v60 = vpack.c.bf16 %v351_v58, %v347_v57  ;;  %v349_v61 = vld [vmem:[%s1836_s29 + $0x98] sm:$0xff]  ;;  %v346_v63 = vld [vmem:[%s1836_s29 + $0x80] sm:$0xff]  ;;  %v348_v2 = vld [vmem:[%s1836_s29 + $0x90] sm:$0xff] }
 0x128   : > { %1177 = vmatprep.subr.bf16.mxu1 %v1176_v51  ;;  %v353_v62 = vld [vmem:[%s1836_s29 + $0xb8] sm:$0xff]  ;;  %v350_v1 = vld [vmem:[%s1836_s29 + $0xa0] sm:$0xff]  ;;  %v352_v3 = vld [vmem:[%s1836_s29 + $0xb0] sm:$0xff]  ;;  %p1488_p3 = pneg %p1487_p2 }
 0x129   : > { %v1180_v0 = vpack.c.bf16 %v353_v62, %v349_v61  ;;  %v1054_v4 = vpack.c.bf16 %v350_v1, %v346_v63  ;;  %v355_v5 = vld [vmem:[%s1836_s29 + $0xc8] sm:$0xff]  ;;  %v357_v7 = vld [vmem:[%s1836_s29 + $0xd8] sm:$0xff]  ;;  %v1182_v8 = vpack.c.bf16 %v352_v3, %v348_v2  ;;  %v354_v11 = vld [vmem:[%s1836_s29 + $0xc0] sm:$0xff] }
 0x12a   : > { %1051 = vmatpush1.bf16.msra.mxu0 %v1050_v55  ;;  %v359_v6 = vld [vmem:[%s1836_s29 + $0xe8] sm:$0xff]  ;;  %v361_v10 = vld [vmem:[%s1836_s29 + $0xf8] sm:$0xff]  ;;  %v358_v12 = vld [vmem:[%s1836_s29 + $0xe0] sm:$0xff]  ;;  %p1495_p8 = pnand %p1494_p13, %p1488_p3 }
 0x12b   : > { %1179 = vmatpush1.bf16.msra.mxu1 %v1178_v59  ;;  %1053 = vmatprep.subr.bf16.mxu0 %v1052_v60  ;;  %v1056_v9 = vpack.c.bf16 %v359_v6, %v355_v5  ;;  %v1184_v13 = vpack.c.bf16 %v361_v10, %v357_v7  ;;  %v356_v14 = vld [vmem:[%s1836_s29 + $0xd0] sm:$0xff]  ;;  %v363_v16 = vld [vmem:[%s1836_s29 + $0x108] sm:$0xff]  ;;  %v365_v18 = vld [vmem:[%s1836_s29 + $0x118] sm:$0xff]  ;;  %v1058_v20 = vpack.c.bf16 %v358_v12, %v354_v11 }
 0x12c   : > { %1181 = vmatprep.subr.bf16.mxu1 %v1180_v0  ;;  %v360_v15 = vld [vmem:[%s1836_s29 + $0xf0] sm:$0xff]  ;;  %v367_v17 = vld [vmem:[%s1836_s29 + $0x128] sm:$0xff]  ;;  %v369_v19 = vld [vmem:[%s1836_s29 + $0x138] sm:$0xff] }
 0x12d   : > { %v1186_v21 = vpack.c.bf16 %v360_v15, %v356_v14  ;;  %v1060_v22 = vpack.c.bf16 %v367_v17, %v363_v16  ;;  %v362_v23 = vld [vmem:[%s1836_s29 + $0x100] sm:$0xff]  ;;  %v364_v25 = vld [vmem:[%s1836_s29 + $0x110] sm:$0xff]  ;;  %v1188_v26 = vpack.c.bf16 %v369_v19, %v365_v18  ;;  %v371_v28 = vld [vmem:[%s1836_s29 + $0x148] sm:$0xff] }
 0x12e   : > { %1055 = vmatpush1.bf16.msra.mxu0 %v1054_v4  ;;  %v366_v24 = vld [vmem:[%s1836_s29 + $0x120] sm:$0xff]  ;;  %v368_v27 = vld [vmem:[%s1836_s29 + $0x130] sm:$0xff]  ;;  %v375_v29 = vld [vmem:[%s1836_s29 + $0x168] sm:$0xff] }
 0x12f   : > { %1183 = vmatpush1.bf16.msra.mxu1 %v1182_v8  ;;  %1057 = vmatprep.subr.bf16.mxu0 %v1056_v9  ;;  %v373_v30 = vld [vmem:[%s1836_s29 + $0x158] sm:$0xff]  ;;  %v1062_v32 = vpack.c.bf16 %v366_v24, %v362_v23  ;;  %v1190_v33 = vpack.c.bf16 %v368_v27, %v364_v25  ;;  %v1064_v34 = vpack.c.bf16 %v375_v29, %v371_v28  ;;  %v370_v35 = vld [vmem:[%s1836_s29 + $0x140] sm:$0xff]  ;;  %v372_v37 = vld [vmem:[%s1836_s29 + $0x150] sm:$0xff] }
 0x130   : > { %1185 = vmatprep.subr.bf16.mxu1 %v1184_v13  ;;  %v377_v31 = vld [vmem:[%s1836_s29 + $0x178] sm:$0xff]  ;;  %v374_v36 = vld [vmem:[%s1836_s29 + $0x160] sm:$0xff]  ;;  %v376_v39 = vld [vmem:[%s1836_s29 + $0x170] sm:$0xff] }
 0x131   : > { %v1192_v38 = vpack.c.bf16 %v377_v31, %v373_v30  ;;  %v379_v40 = vld [vmem:[%s1836_s29 + $0x188] sm:$0xff]  ;;  %v381_v42 = vld [vmem:[%s1836_s29 + $0x198] sm:$0xff]  ;;  %v1066_v44 = vpack.c.bf16 %v374_v36, %v370_v35  ;;  %v1194_v45 = vpack.c.bf16 %v376_v39, %v372_v37  ;;  %v378_v47 = vld [vmem:[%s1836_s29 + $0x180] sm:$0xff] }
 0x132   : > { %1059 = vmatpush1.bf16.msra.mxu0 %v1058_v20  ;;  %v383_v41 = vld [vmem:[%s1836_s29 + $0x1a8] sm:$0xff]  ;;  %v385_v43 = vld [vmem:[%s1836_s29 + $0x1b8] sm:$0xff]  ;;  %v382_v48 = vld [vmem:[%s1836_s29 + $0x1a0] sm:$0xff] }
 0x133   : > { %1187 = vmatpush1.bf16.msra.mxu1 %v1186_v21  ;;  %1061 = vmatprep.subr.bf16.mxu0 %v1060_v22  ;;  %v1068_v46 = vpack.c.bf16 %v383_v41, %v379_v40  ;;  %v380_v49 = vld [vmem:[%s1836_s29 + $0x190] sm:$0xff]  ;;  %v1196_v50 = vpack.c.bf16 %v385_v43, %v381_v42  ;;  %v387_v52 = vld [vmem:[%s1836_s29 + $0x1c8] sm:$0xff]  ;;  %v389_v54 = vld [vmem:[%s1836_s29 + $0x1d8] sm:$0xff]  ;;  %v1070_v56 = vpack.c.bf16 %v382_v48, %v378_v47 }
 0x134   : > { %1189 = vmatprep.subr.bf16.mxu1 %v1188_v26  ;;  %v384_v51 = vld [vmem:[%s1836_s29 + $0x1b0] sm:$0xff]  ;;  %v391_v53 = vld [vmem:[%s1836_s29 + $0x1e8] sm:$0xff]  ;;  %v393_v55 = vld [vmem:[%s1836_s29 + $0x1f8] sm:$0xff] }
 0x135   : > { %v1198_v57 = vpack.c.bf16 %v384_v51, %v380_v49  ;;  %v1072_v58 = vpack.c.bf16 %v391_v53, %v387_v52  ;;  %v386_v59 = vld [vmem:[%s1836_s29 + $0x1c0] sm:$0xff]  ;;  %v388_v61 = vld [vmem:[%s1836_s29 + $0x1d0] sm:$0xff]  ;;  %v1200_v62 = vpack.c.bf16 %v393_v55, %v389_v54  ;;  %v395_v0 = vld [vmem:[%s1836_s29 + $0x208] sm:$0xff] }
 0x136   : > { %1063 = vmatpush1.bf16.msra.mxu0 %v1062_v32  ;;  %v390_v60 = vld [vmem:[%s1836_s29 + $0x1e0] sm:$0xff]  ;;  %v392_v63 = vld [vmem:[%s1836_s29 + $0x1f0] sm:$0xff]  ;;  %v399_v1 = vld [vmem:[%s1836_s29 + $0x228] sm:$0xff] }
 0x137   : > { %1191 = vmatpush1.bf16.msra.mxu1 %v1190_v33  ;;  %1065 = vmatprep.subr.bf16.mxu0 %v1064_v34  ;;  %v397_v2 = vld [vmem:[%s1836_s29 + $0x218] sm:$0xff]  ;;  %v1074_v4 = vpack.c.bf16 %v390_v60, %v386_v59  ;;  %v1202_v5 = vpack.c.bf16 %v392_v63, %v388_v61  ;;  %v1076_v6 = vpack.c.bf16 %v399_v1, %v395_v0  ;;  %v394_v7 = vld [vmem:[%s1836_s29 + $0x200] sm:$0xff]  ;;  %v396_v9 = vld [vmem:[%s1836_s29 + $0x210] sm:$0xff] }
 0x138   : > { %1193 = vmatprep.subr.bf16.mxu1 %v1192_v38  ;;  %v401_v3 = vld [vmem:[%s1836_s29 + $0x238] sm:$0xff]  ;;  %v398_v8 = vld [vmem:[%s1836_s29 + $0x220] sm:$0xff]  ;;  %v400_v11 = vld [vmem:[%s1836_s29 + $0x230] sm:$0xff] }
 0x139   : > { %v1204_v10 = vpack.c.bf16 %v401_v3, %v397_v2  ;;  %v403_v12 = vld [vmem:[%s1836_s29 + $0x248] sm:$0xff]  ;;  %v405_v14 = vld [vmem:[%s1836_s29 + $0x258] sm:$0xff]  ;;  %v1078_v16 = vpack.c.bf16 %v398_v8, %v394_v7  ;;  %v1206_v17 = vpack.c.bf16 %v400_v11, %v396_v9  ;;  %v402_v19 = vld [vmem:[%s1836_s29 + $0x240] sm:$0xff] }
 0x13a   : > { %1067 = vmatpush1.bf16.msra.mxu0 %v1066_v44  ;;  %v407_v13 = vld [vmem:[%s1836_s29 + $0x268] sm:$0xff]  ;;  %v409_v15 = vld [vmem:[%s1836_s29 + $0x278] sm:$0xff]  ;;  %v406_v20 = vld [vmem:[%s1836_s29 + $0x260] sm:$0xff] }
 0x13b   : > { %1195 = vmatpush1.bf16.msra.mxu1 %v1194_v45  ;;  %1069 = vmatprep.subr.bf16.mxu0 %v1068_v46  ;;  %v1080_v18 = vpack.c.bf16 %v407_v13, %v403_v12  ;;  %v404_v21 = vld [vmem:[%s1836_s29 + $0x250] sm:$0xff]  ;;  %v1208_v22 = vpack.c.bf16 %v409_v15, %v405_v14  ;;  %v411_v24 = vld [vmem:[%s1836_s29 + $0x288] sm:$0xff]  ;;  %v413_v26 = vld [vmem:[%s1836_s29 + $0x298] sm:$0xff]  ;;  %v1082_v28 = vpack.c.bf16 %v406_v20, %v402_v19 }
 0x13c   : > { %1197 = vmatprep.subr.bf16.mxu1 %v1196_v50  ;;  %v408_v23 = vld [vmem:[%s1836_s29 + $0x270] sm:$0xff]  ;;  %v415_v25 = vld [vmem:[%s1836_s29 + $0x2a8] sm:$0xff]  ;;  %v417_v27 = vld [vmem:[%s1836_s29 + $0x2b8] sm:$0xff] }
 0x13d   : > { %v1210_v29 = vpack.c.bf16 %v408_v23, %v404_v21  ;;  %v1084_v30 = vpack.c.bf16 %v415_v25, %v411_v24  ;;  %v410_v31 = vld [vmem:[%s1836_s29 + $0x280] sm:$0xff]  ;;  %v412_v33 = vld [vmem:[%s1836_s29 + $0x290] sm:$0xff]  ;;  %v1212_v34 = vpack.c.bf16 %v417_v27, %v413_v26  ;;  %v419_v36 = vld [vmem:[%s1836_s29 + $0x2c8] sm:$0xff] }
 0x13e   : > { %1071 = vmatpush1.bf16.msra.mxu0 %v1070_v56  ;;  %v414_v32 = vld [vmem:[%s1836_s29 + $0x2a0] sm:$0xff]  ;;  %v416_v35 = vld [vmem:[%s1836_s29 + $0x2b0] sm:$0xff]  ;;  %v423_v37 = vld [vmem:[%s1836_s29 + $0x2e8] sm:$0xff] }
 0x13f   : > { %1199 = vmatpush1.bf16.msra.mxu1 %v1198_v57  ;;  %1073 = vmatprep.subr.bf16.mxu0 %v1072_v58  ;;  %v421_v38 = vld [vmem:[%s1836_s29 + $0x2d8] sm:$0xff]  ;;  %v1086_v40 = vpack.c.bf16 %v414_v32, %v410_v31  ;;  %v418_v41 = vld [vmem:[%s1836_s29 + $0x2c0] sm:$0xff]  ;;  %v1214_v42 = vpack.c.bf16 %v416_v35, %v412_v33  ;;  %v1088_v43 = vpack.c.bf16 %v423_v37, %v419_v36  ;;  %v420_v45 = vld [vmem:[%s1836_s29 + $0x2d0] sm:$0xff] }
 0x140   : > { %1201 = vmatprep.subr.bf16.mxu1 %v1200_v62  ;;  %v425_v39 = vld [vmem:[%s1836_s29 + $0x2f8] sm:$0xff]  ;;  %v422_v44 = vld [vmem:[%s1836_s29 + $0x2e0] sm:$0xff]  ;;  %v424_v46 = vld [vmem:[%s1836_s29 + $0x2f0] sm:$0xff] }
 0x141   : > { %v1216_v47 = vpack.c.bf16 %v425_v39, %v421_v38  ;;  %v427_v48 = vld [vmem:[%s1836_s29 + $0x308] sm:$0xff]  ;;  %v429_v51 = vld [vmem:[%s1836_s29 + $0x318] sm:$0xff]  ;;  %v1090_v53 = vpack.c.bf16 %v422_v44, %v418_v41  ;;  %v1218_v54 = vpack.c.bf16 %v424_v46, %v420_v45  ;;  %v426_v56 = vld [vmem:[%s1836_s29 + $0x300] sm:$0xff] }
 0x142   : > { %1075 = vmatpush1.bf16.msra.mxu0 %v1074_v4  ;;  %v431_v49 = vld [vmem:[%s1836_s29 + $0x328] sm:$0xff]  ;;  %v433_v52 = vld [vmem:[%s1836_s29 + $0x338] sm:$0xff]  ;;  %v430_v57 = vld [vmem:[%s1836_s29 + $0x320] sm:$0xff] }
 0x143   : > { %1203 = vmatpush1.bf16.msra.mxu1 %v1202_v5  ;;  %1077 = vmatprep.subr.bf16.mxu0 %v1076_v6  ;;  %v327_v50 = vld [vmem:[#allocation2 + $0x8] sm:$0xff]  ;;  %v1092_v55 = vpack.c.bf16 %v431_v49, %v427_v48  ;;  %v428_v58 = vld [vmem:[%s1836_s29 + $0x310] sm:$0xff]  ;;  %v1220_v59 = vpack.c.bf16 %v433_v52, %v429_v51  ;;  %v437_v63 = vld [vmem:[%s1836_s29 + $0x358] sm:$0xff]  ;;  %v1094_v1 = vpack.c.bf16 %v430_v57, %v426_v56 }
 0x144   : > { %1205 = vmatprep.subr.bf16.mxu1 %v1204_v10  ;;  %650 = vmatprep.mubr.f32.mxu0 %v327_v50  ;;  %v432_v60 = vld [vmem:[%s1836_s29 + $0x330] sm:$0xff]  ;;  %v435_v61 = vld [vmem:[%s1836_s29 + $0x348] sm:$0xff]  ;;  %v441_v0 = vld [vmem:[%s1836_s29 + $0x378] sm:$0xff] }
 0x145   : > { %792 = vmatprep.mubr.f32.mxu1 %v327_v50  ;;  %v439_v62 = vld [vmem:[%s1836_s29 + $0x368] sm:$0xff]  ;;  %v1222_v2 = vpack.c.bf16 %v432_v60, %v428_v58  ;;  %v434_v4 = vld [vmem:[%s1836_s29 + $0x340] sm:$0xff]  ;;  %v436_v6 = vld [vmem:[%s1836_s29 + $0x350] sm:$0xff]  ;;  %v1224_v7 = vpack.c.bf16 %v441_v0, %v437_v63 }
 0x146   : > { %1079 = vmatpush1.bf16.msra.mxu0 %v1078_v16  ;;  %v1096_v3 = vpack.c.bf16 %v439_v62, %v435_v61  ;;  %v438_v5 = vld [vmem:[%s1836_s29 + $0x360] sm:$0xff]  ;;  %v440_v8 = vld [vmem:[%s1836_s29 + $0x370] sm:$0xff]  ;;  %v443_v9 = vld [vmem:[%s1836_s29 + $0x388] sm:$0xff] }
 0x147   : > { %1207 = vmatpush1.bf16.msra.mxu1 %v1206_v17  ;;  %1081 = vmatprep.subr.bf16.mxu0 %v1080_v18  ;;  %v447_v10 = vld [vmem:[%s1836_s29 + $0x3a8] sm:$0xff]  ;;  %v445_v11 = vld [vmem:[%s1836_s29 + $0x398] sm:$0xff]  ;;  %v1098_v13 = vpack.c.bf16 %v438_v5, %v434_v4  ;;  %v1226_v14 = vpack.c.bf16 %v440_v8, %v436_v6  ;;  %v442_v16 = vld [vmem:[%s1836_s29 + $0x380] sm:$0xff] }
 0x148   : > { %1209 = vmatprep.subr.bf16.mxu1 %v1208_v22  ;;  %v449_v12 = vld [vmem:[%s1836_s29 + $0x3b8] sm:$0xff]  ;;  %v1100_v15 = vpack.c.bf16 %v447_v10, %v443_v9  ;;  %v446_v17 = vld [vmem:[%s1836_s29 + $0x3a0] sm:$0xff]  ;;  %v444_v18 = vld [vmem:[%s1836_s29 + $0x390] sm:$0xff] }
 0x149   : > { %v1228_v19 = vpack.c.bf16 %v449_v12, %v445_v11  ;;  %v448_v20 = vld [vmem:[%s1836_s29 + $0x3b0] sm:$0xff]  ;;  %v451_v21 = vld [vmem:[%s1836_s29 + $0x3c8] sm:$0xff]  ;;  %v453_v23 = vld [vmem:[%s1836_s29 + $0x3d8] sm:$0xff]  ;;  %v1102_v25 = vpack.c.bf16 %v446_v17, %v442_v16 }
 0x14a   : > { %1083 = vmatpush1.bf16.msra.mxu0 %v1082_v28  ;;  %v455_v22 = vld [vmem:[%s1836_s29 + $0x3e8] sm:$0xff]  ;;  %v457_v24 = vld [vmem:[%s1836_s29 + $0x3f8] sm:$0xff]  ;;  %v1230_v26 = vpack.c.bf16 %v448_v20, %v444_v18  ;;  %v450_v28 = vld [vmem:[%s1836_s29 + $0x3c0] sm:$0xff] }
 0x14b   : > { %1211 = vmatpush1.bf16.msra.mxu1 %v1210_v29  ;;  %1085 = vmatprep.subr.bf16.mxu0 %v1084_v30  ;;  %v1104_v27 = vpack.c.bf16 %v455_v22, %v451_v21  ;;  %v454_v29 = vld [vmem:[%s1836_s29 + $0x3e0] sm:$0xff]  ;;  %v452_v30 = vld [vmem:[%s1836_s29 + $0x3d0] sm:$0xff]  ;;  %v1232_v31 = vpack.c.bf16 %v457_v24, %v453_v23  ;;  %v459_v33 = vld [vmem:[%s1836_s29 + $0x408] sm:$0xff] }
 0x14c   : > { %1213 = vmatprep.subr.bf16.mxu1 %v1212_v34  ;;  %v456_v32 = vld [vmem:[%s1836_s29 + $0x3f0] sm:$0xff]  ;;  %v463_v34 = vld [vmem:[%s1836_s29 + $0x428] sm:$0xff]  ;;  %v461_v35 = vld [vmem:[%s1836_s29 + $0x418] sm:$0xff]  ;;  %v1106_v37 = vpack.c.bf16 %v454_v29, %v450_v28 }
 0x14d   : > { %v465_v36 = vld [vmem:[%s1836_s29 + $0x438] sm:$0xff]  ;;  %v1234_v38 = vpack.c.bf16 %v456_v32, %v452_v30  ;;  %v1108_v39 = vpack.c.bf16 %v463_v34, %v459_v33  ;;  %v462_v41 = vld [vmem:[%s1836_s29 + $0x420] sm:$0xff]  ;;  %v464_v44 = vld [vmem:[%s1836_s29 + $0x430] sm:$0xff] }
 0x14e   : > { %1087 = vmatpush1.bf16.msra.mxu0 %v1086_v40  ;;  %v458_v40 = vld [vmem:[%s1836_s29 + $0x400] sm:$0xff]  ;;  %v467_v45 = vld [vmem:[%s1836_s29 + $0x448] sm:$0xff]  ;;  %v473_v48 = vld [vmem:[%s1836_s29 + $0x478] sm:$0xff] }
 0x14f   : > { %1215 = vmatpush1.bf16.msra.mxu1 %v1214_v42  ;;  %1089 = vmatprep.subr.bf16.mxu0 %v1088_v43  ;;  %v460_v42 = vld [vmem:[%s1836_s29 + $0x410] sm:$0xff]  ;;  %v1236_v43 = vpack.c.bf16 %v465_v36, %v461_v35  ;;  %v471_v46 = vld [vmem:[%s1836_s29 + $0x468] sm:$0xff]  ;;  %v326_v49 = vld [vmem:[#allocation2] sm:$0xff]  ;;  %v1110_v50 = vpack.c.bf16 %v462_v41, %v458_v40 }
 0x150   : > { %1217 = vmatprep.subr.bf16.mxu1 %v1216_v47  ;;  %v469_v47 = vld [vmem:[%s1836_s29 + $0x458] sm:$0xff]  ;;  %v1238_v51 = vpack.c.bf16 %v464_v44, %v460_v42  ;;  %v1112_v52 = vpack.c.bf16 %v471_v46, %v467_v45  ;;  %v472_v57 = vld [vmem:[%s1836_s29 + $0x470] sm:$0xff]  ;;  %v475_v58 = vld [vmem:[%s1836_s29 + $0x488] sm:$0xff] }
 0x151   : > { %v1240_v56 = vpack.c.bf16 %v473_v48, %v469_v47  ;;  %v477_v60 = vld [vmem:[%s1836_s29 + $0x498] sm:$0xff]  ;;  %v480_v5 = vld [vmem:[%s1836_s29 + $0x4b0] sm:$0xff]  ;;  %v483_v6 = vld [vmem:[%s1836_s29 + $0x4c8] sm:$0xff] }
 0x152   : > { %1091 = vmatpush1.bf16.msra.mxu0 %v1090_v53  ;;  %v466_v53 = vld [vmem:[%s1836_s29 + $0x440] sm:$0xff]  ;;  %v481_v61 = vld [vmem:[%s1836_s29 + $0x4b8] sm:$0xff]  ;;  %v488_v17 = vld [vmem:[%s1836_s29 + $0x4f0] sm:$0xff] }
 0x153   : > { %1219 = vmatpush1.bf16.msra.mxu1 %v1218_v54  ;;  %1093 = vmatprep.subr.bf16.mxu0 %v1092_v55  ;;  %v470_v54 = vld [vmem:[%s1836_s29 + $0x460] sm:$0xff]  ;;  %v468_v55 = vld [vmem:[%s1836_s29 + $0x450] sm:$0xff]  ;;  %v1244_v4 = vpack.c.bf16 %v481_v61, %v477_v60  ;;  %v485_v8 = vld [vmem:[%s1836_s29 + $0x4d8] sm:$0xff] }
 0x154   : > { %1221 = vmatprep.subr.bf16.mxu1 %v1220_v59  ;;  %v479_v59 = vld [vmem:[%s1836_s29 + $0x4a8] sm:$0xff]  ;;  %v1114_v62 = vpack.c.bf16 %v470_v54, %v466_v53  ;;  %v1242_v63 = vpack.c.bf16 %v472_v57, %v468_v55  ;;  %v489_v9 = vld [vmem:[%s1836_s29 + $0x4f8] sm:$0xff]  ;;  %v496_v29 = vld [vmem:[%s1836_s29 + $0x530] sm:$0xff] }
 0x155   : > { %v1116_v0 = vpack.c.bf16 %v479_v59, %v475_v58  ;;  %v1248_v16 = vpack.c.bf16 %v489_v9, %v485_v8  ;;  %v491_v18 = vld [vmem:[%s1836_s29 + $0x508] sm:$0xff]  ;;  %v493_v20 = vld [vmem:[%s1836_s29 + $0x518] sm:$0xff]  ;;  %v504_v41 = vld [vmem:[%s1836_s29 + $0x570] sm:$0xff] }
 0x156   : > { %1095 = vmatpush1.bf16.msra.mxu0 %v1094_v1  ;;  %v474_v1 = vld [vmem:[%s1836_s29 + $0x480] sm:$0xff]  ;;  %v497_v21 = vld [vmem:[%s1836_s29 + $0x538] sm:$0xff]  ;;  %v499_v30 = vld [vmem:[%s1836_s29 + $0x548] sm:$0xff] }
 0x157   : > { %1223 = vmatpush1.bf16.msra.mxu1 %v1222_v2  ;;  %1097 = vmatprep.subr.bf16.mxu0 %v1096_v3  ;;  %v478_v2 = vld [vmem:[%s1836_s29 + $0x4a0] sm:$0xff]  ;;  %v476_v3 = vld [vmem:[%s1836_s29 + $0x490] sm:$0xff]  ;;  %v1252_v28 = vpack.c.bf16 %v497_v21, %v493_v20  ;;  %v501_v32 = vld [vmem:[%s1836_s29 + $0x558] sm:$0xff] }
 0x158   : > { %1225 = vmatprep.subr.bf16.mxu1 %v1224_v7  ;;  %v487_v7 = vld [vmem:[%s1836_s29 + $0x4e8] sm:$0xff]  ;;  %v1118_v10 = vpack.c.bf16 %v478_v2, %v474_v1  ;;  %v1246_v11 = vpack.c.bf16 %v480_v5, %v476_v3  ;;  %v505_v33 = vld [vmem:[%s1836_s29 + $0x578] sm:$0xff]  ;;  %v506_v47 = vld [vmem:[%s1836_s29 + $0x580] sm:$0xff] }
 0x159   : > { %v1120_v12 = vpack.c.bf16 %v487_v7, %v483_v6  ;;  %v1256_v40 = vpack.c.bf16 %v505_v33, %v501_v32  ;;  %v507_v42 = vld [vmem:[%s1836_s29 + $0x588] sm:$0xff]  ;;  %v509_v44 = vld [vmem:[%s1836_s29 + $0x598] sm:$0xff]  ;;  %v520_v2 = vld [vmem:[%s1836_s29 + $0x5f0] sm:$0xff] }
 0x15a   : > { %1099 = vmatpush1.bf16.msra.mxu0 %v1098_v13  ;;  %v482_v13 = vld [vmem:[%s1836_s29 + $0x4c0] sm:$0xff]  ;;  %v513_v45 = vld [vmem:[%s1836_s29 + $0x5b8] sm:$0xff]  ;;  %v515_v54 = vld [vmem:[%s1836_s29 + $0x5c8] sm:$0xff] }
 0x15b   : > { %1227 = vmatpush1.bf16.msra.mxu1 %v1226_v14  ;;  %1101 = vmatprep.subr.bf16.mxu0 %v1100_v15  ;;  %v486_v14 = vld [vmem:[%s1836_s29 + $0x4e0] sm:$0xff]  ;;  %v484_v15 = vld [vmem:[%s1836_s29 + $0x4d0] sm:$0xff]  ;;  %v1260_v53 = vpack.c.bf16 %v513_v45, %v509_v44  ;;  %v519_v55 = vld [vmem:[%s1836_s29 + $0x5e8] sm:$0xff] }
 0x15c   : > { %1229 = vmatprep.subr.bf16.mxu1 %v1228_v19  ;;  %v495_v19 = vld [vmem:[%s1836_s29 + $0x528] sm:$0xff]  ;;  %v1122_v22 = vpack.c.bf16 %v486_v14, %v482_v13  ;;  %v1250_v23 = vpack.c.bf16 %v488_v17, %v484_v15  ;;  %v517_v57 = vld [vmem:[%s1836_s29 + $0x5d8] sm:$0xff]  ;;  %v1136_v61 = vpack.c.bf16 %v519_v55, %v515_v54  ;;  %v528_v14 = vld [vmem:[%s1836_s29 + $0x630] sm:$0xff] }
 0x15d   : > { %v1124_v24 = vpack.c.bf16 %v495_v19, %v491_v18  ;;  %v521_v58 = vld [vmem:[%s1836_s29 + $0x5f8] sm:$0xff]  ;;  %v523_v3 = vld [vmem:[%s1836_s29 + $0x608] sm:$0xff] }
 0x15e   : > { %1103 = vmatpush1.bf16.msra.mxu0 %v1102_v25  ;;  %v490_v25 = vld [vmem:[%s1836_s29 + $0x500] sm:$0xff]  ;;  %v1264_v1 = vpack.c.bf16 %v521_v58, %v517_v57  ;;  %v525_v5 = vld [vmem:[%s1836_s29 + $0x618] sm:$0xff]  ;;  %v531_v15 = vld [vmem:[%s1836_s29 + $0x648] sm:$0xff] }
 0x15f   : > { %1231 = vmatpush1.bf16.msra.mxu1 %v1230_v26  ;;  %1105 = vmatprep.subr.bf16.mxu0 %v1104_v27  ;;  %v494_v26 = vld [vmem:[%s1836_s29 + $0x520] sm:$0xff]  ;;  %v492_v27 = vld [vmem:[%s1836_s29 + $0x510] sm:$0xff]  ;;  %v529_v6 = vld [vmem:[%s1836_s29 + $0x638] sm:$0xff] }
 0x160   : > { %1233 = vmatprep.subr.bf16.mxu1 %v1232_v31  ;;  %v503_v31 = vld [vmem:[%s1836_s29 + $0x568] sm:$0xff]  ;;  %v1126_v34 = vpack.c.bf16 %v494_v26, %v490_v25  ;;  %v1254_v35 = vpack.c.bf16 %v496_v29, %v492_v27  ;;  %v1268_v13 = vpack.c.bf16 %v529_v6, %v525_v5  ;;  %v533_v17 = vld [vmem:[%s1836_s29 + $0x658] sm:$0xff]  ;;  %v536_v26 = vld [vmem:[%s1836_s29 + $0x670] sm:$0xff] }
 0x161   : > { %v1128_v36 = vpack.c.bf16 %v503_v31, %v499_v30  ;;  %v537_v18 = vld [vmem:[%s1836_s29 + $0x678] sm:$0xff]  ;;  %v539_v27 = vld [vmem:[%s1836_s29 + $0x688] sm:$0xff]  ;;  %v554_v58 = vld [vmem:[%s1836_s29 + $0x700] sm:$0xff] }
 0x162   : > { %1107 = vmatpush1.bf16.msra.mxu0 %v1106_v37  ;;  %v498_v37 = vld [vmem:[%s1836_s29 + $0x540] sm:$0xff]  ;;  %v1272_v25 = vpack.c.bf16 %v537_v18, %v533_v17  ;;  %v541_v29 = vld [vmem:[%s1836_s29 + $0x698] sm:$0xff] }
 0x163   : > { %1235 = vmatpush1.bf16.msra.mxu1 %v1234_v38  ;;  %1109 = vmatprep.subr.bf16.mxu0 %v1108_v39  ;;  %v502_v38 = vld [vmem:[%s1836_s29 + $0x560] sm:$0xff]  ;;  %v500_v39 = vld [vmem:[%s1836_s29 + $0x550] sm:$0xff]  ;;  %v545_v30 = vld [vmem:[%s1836_s29 + $0x6b8] sm:$0xff] }
 0x164   : > { %1237 = vmatprep.subr.bf16.mxu1 %v1236_v43  ;;  %v511_v43 = vld [vmem:[%s1836_s29 + $0x5a8] sm:$0xff]  ;;  %v1130_v46 = vpack.c.bf16 %v502_v38, %v498_v37  ;;  %v1258_v48 = vpack.c.bf16 %v504_v41, %v500_v39  ;;  %v1276_v37 = vpack.c.bf16 %v545_v30, %v541_v29  ;;  %v544_v38 = vld [vmem:[%s1836_s29 + $0x6b0] sm:$0xff]  ;;  %v549_v41 = vld [vmem:[%s1836_s29 + $0x6d8] sm:$0xff] }
 0x165   : > { %651 = vmatmul.mubr.f32.vlgmr.msra.gmra.mrb[0].mxu0 %v326_v49  ;;  %v547_v39 = vld [vmem:[%s1836_s29 + $0x6c8] sm:$0xff]  ;;  %v561_v54 = vld [vmem:[%s1836_s29 + $0x738] sm:$0xff]  ;;  %v562_v6 = vld [vmem:[%s1836_s29 + $0x740] sm:$0xff] }
 0x166   : > { %1111 = vmatpush1.bf16.msra.mxu0 %v1110_v50  ;;  %793 = vmatmul.mubr.f32.vlgmr.msra.gmra.mrb[0].mxu1 %v326_v49  ;;  %v1132_v49 = vpack.c.bf16 %v511_v43, %v507_v42  ;;  %v510_v50 = vld [vmem:[%s1836_s29 + $0x5a0] sm:$0xff]  ;;  %v553_v42 = vld [vmem:[%s1836_s29 + $0x6f8] sm:$0xff] }
 0x167   : > { %1239 = vmatpush1.bf16.msra.mxu1 %v1238_v51  ;;  %1113 = vmatprep.subr.bf16.mxu0 %v1112_v52  ;;  %v508_v51 = vld [vmem:[%s1836_s29 + $0x590] sm:$0xff]  ;;  %v1134_v59 = vpack.c.bf16 %v510_v50, %v506_v47  ;;  %v550_v47 = vld [vmem:[%s1836_s29 + $0x6e0] sm:$0xff] }
 0x168   : > { %1241 = vmatprep.subr.bf16.mxu1 %v1240_v56  ;;  %v512_v52 = vld [vmem:[%s1836_s29 + $0x5b0] sm:$0xff]  ;;  %v570_v18 = vld [vmem:[%s1836_s29 + $0x780] sm:$0xff] }
 0x169   : > { %v329_v56 = vld [vmem:[#allocation2 + $0x18] sm:$0xff]  ;;  %v1262_v60 = vpack.c.bf16 %v512_v52, %v508_v51  ;;  %v555_v51 = vld [vmem:[%s1836_s29 + $0x708] sm:$0xff]  ;;  %v578_v30 = vld [vmem:[%s1836_s29 + $0x7c0] sm:$0xff] }
 0x16a   : > { %1115 = vmatpush1.bf16.msra.mxu0 %v1114_v62  ;;  %721 = vmatprep.mubr.f32.mxu0 %v329_v56  ;;  %v514_v62 = vld [vmem:[%s1836_s29 + $0x5c0] sm:$0xff]  ;;  %v552_v50 = vld [vmem:[%s1836_s29 + $0x6f0] sm:$0xff]  ;;  %v559_v52 = vld [vmem:[%s1836_s29 + $0x728] sm:$0xff] }
 0x16b   : > { %1243 = vmatpush1.bf16.msra.mxu1 %v1242_v63  ;;  %1117 = vmatprep.subr.bf16.mxu0 %v1116_v0  ;;  %v518_v63 = vld [vmem:[%s1836_s29 + $0x5e0] sm:$0xff]  ;;  %v516_v0 = vld [vmem:[%s1836_s29 + $0x5d0] sm:$0xff]  ;;  %v1156_v57 = vpack.c.bf16 %v559_v52, %v555_v51 }
 0x16c   : > { %1245 = vmatprep.subr.bf16.mxu1 %v1244_v4  ;;  %863 = vmatprep.mubr.f32.mxu1 %v329_v56  ;;  %v527_v4 = vld [vmem:[%s1836_s29 + $0x628] sm:$0xff]  ;;  %v1138_v7 = vpack.c.bf16 %v518_v63, %v514_v62  ;;  %v1266_v8 = vpack.c.bf16 %v520_v2, %v516_v0  ;;  %v560_v62 = vld [vmem:[%s1836_s29 + $0x730] sm:$0xff]  ;;  %v569_v2 = vld [vmem:[%s1836_s29 + $0x778] sm:$0xff] }
 0x16d   : > { %v1140_v9 = vpack.c.bf16 %v527_v4, %v523_v3  ;;  %v563_v63 = vld [vmem:[%s1836_s29 + $0x748] sm:$0xff] }
 0x16e   : > { %1119 = vmatpush1.bf16.msra.mxu0 %v1118_v10  ;;  %v522_v10 = vld [vmem:[%s1836_s29 + $0x600] sm:$0xff]  ;;  %v567_v0 = vld [vmem:[%s1836_s29 + $0x768] sm:$0xff] }
 0x16f   : > { %1247 = vmatpush1.bf16.msra.mxu1 %v1246_v11  ;;  %1121 = vmatprep.subr.bf16.mxu0 %v1120_v12  ;;  %v526_v11 = vld [vmem:[%s1836_s29 + $0x620] sm:$0xff]  ;;  %v524_v12 = vld [vmem:[%s1836_s29 + $0x610] sm:$0xff]  ;;  %v1160_v5 = vpack.c.bf16 %v567_v0, %v563_v63 }
 0x170   : > { %1249 = vmatprep.subr.bf16.mxu1 %v1248_v16  ;;  %v535_v16 = vld [vmem:[%s1836_s29 + $0x668] sm:$0xff]  ;;  %v1142_v19 = vpack.c.bf16 %v526_v11, %v522_v10  ;;  %v1270_v20 = vpack.c.bf16 %v528_v14, %v524_v12  ;;  %v568_v10 = vld [vmem:[%s1836_s29 + $0x770] sm:$0xff]  ;;  %v577_v14 = vld [vmem:[%s1836_s29 + $0x7b8] sm:$0xff] }
 0x171   : > { %v1144_v21 = vpack.c.bf16 %v535_v16, %v531_v15  ;;  %v571_v11 = vld [vmem:[%s1836_s29 + $0x788] sm:$0xff] }
 0x172   : > { %1123 = vmatpush1.bf16.msra.mxu0 %v1122_v22  ;;  %v530_v22 = vld [vmem:[%s1836_s29 + $0x640] sm:$0xff]  ;;  %v575_v12 = vld [vmem:[%s1836_s29 + $0x7a8] sm:$0xff] }
 0x173   : > { %1251 = vmatpush1.bf16.msra.mxu1 %v1250_v23  ;;  %1125 = vmatprep.subr.bf16.mxu0 %v1124_v24  ;;  %v534_v23 = vld [vmem:[%s1836_s29 + $0x660] sm:$0xff]  ;;  %v532_v24 = vld [vmem:[%s1836_s29 + $0x650] sm:$0xff]  ;;  %v1164_v17 = vpack.c.bf16 %v575_v12, %v571_v11 }
 0x174   : > { %1253 = vmatprep.subr.bf16.mxu1 %v1252_v28  ;;  %v543_v28 = vld [vmem:[%s1836_s29 + $0x6a8] sm:$0xff]  ;;  %v1146_v31 = vpack.c.bf16 %v534_v23, %v530_v22  ;;  %v1274_v32 = vpack.c.bf16 %v536_v26, %v532_v24  ;;  %v576_v22 = vld [vmem:[%s1836_s29 + $0x7b0] sm:$0xff]  ;;  %v585_v26 = vld [vmem:[%s1836_s29 + $0x7f8] sm:$0xff] }
 0x175   : > { %v1148_v33 = vpack.c.bf16 %v543_v28, %v539_v27  ;;  %v579_v23 = vld [vmem:[%s1836_s29 + $0x7c8] sm:$0xff] }
 0x176   : > { %1127 = vmatpush1.bf16.msra.mxu0 %v1126_v34  ;;  %v538_v34 = vld [vmem:[%s1836_s29 + $0x680] sm:$0xff]  ;;  %v583_v24 = vld [vmem:[%s1836_s29 + $0x7e8] sm:$0xff] }
 0x177   : > { %1255 = vmatpush1.bf16.msra.mxu1 %v1254_v35  ;;  %1129 = vmatprep.subr.bf16.mxu0 %v1128_v36  ;;  %v542_v35 = vld [vmem:[%s1836_s29 + $0x6a0] sm:$0xff]  ;;  %v540_v36 = vld [vmem:[%s1836_s29 + $0x690] sm:$0xff]  ;;  %v1168_v29 = vpack.c.bf16 %v583_v24, %v579_v23 }
 0x178   : > { %1257 = vmatprep.subr.bf16.mxu1 %v1256_v40  ;;  %v551_v40 = vld [vmem:[%s1836_s29 + $0x6e8] sm:$0xff]  ;;  %v1150_v43 = vpack.c.bf16 %v542_v35, %v538_v34  ;;  %v1278_v44 = vpack.c.bf16 %v544_v38, %v540_v36  ;;  %v584_v34 = vld [vmem:[%s1836_s29 + $0x7f0] sm:$0xff] }
 0x179   : > { %v1152_v45 = vpack.c.bf16 %v551_v40, %v547_v39 }
 0x17a   : > { %1131 = vmatpush1.bf16.msra.mxu0 %v1130_v46  ;;  %v546_v46 = vld [vmem:[%s1836_s29 + $0x6c0] sm:$0xff] }
 0x17b   : > { %1259 = vmatpush1.bf16.msra.mxu1 %v1258_v48  ;;  %1133 = vmatprep.subr.bf16.mxu0 %v1132_v49  ;;  %v548_v48 = vld [vmem:[%s1836_s29 + $0x6d0] sm:$0xff]  ;;  %v1280_v49 = vpack.c.bf16 %v553_v42, %v549_v41  ;;  %v1154_v55 = vpack.c.bf16 %v550_v47, %v546_v46 }
 0x17c   : > { %1261 = vmatprep.subr.bf16.mxu1 %v1260_v53  ;;  %v557_v53 = vld [vmem:[%s1836_s29 + $0x718] sm:$0xff]  ;;  %v1282_v56 = vpack.c.bf16 %v552_v50, %v548_v48 }
 0x17e   : > { %1135 = vmatpush1.bf16.msra.mxu0 %v1134_v59  ;;  %v558_v59 = vld [vmem:[%s1836_s29 + $0x720] sm:$0xff] }
 0x17f   : > { %1263 = vmatpush1.bf16.msra.mxu1 %v1262_v60  ;;  %1137 = vmatprep.subr.bf16.mxu0 %v1136_v61  ;;  %v556_v60 = vld [vmem:[%s1836_s29 + $0x710] sm:$0xff]  ;;  %v1284_v61 = vpack.c.bf16 %v561_v54, %v557_v53  ;;  %v1158_v3 = vpack.c.bf16 %v558_v59, %v554_v58 }
 0x180   : > { %1265 = vmatprep.subr.bf16.mxu1 %v1264_v1  ;;  %v565_v1 = vld [vmem:[%s1836_s29 + $0x758] sm:$0xff]  ;;  %v1286_v4 = vpack.c.bf16 %v560_v62, %v556_v60 }
 0x182   : > { %1139 = vmatpush1.bf16.msra.mxu0 %v1138_v7  ;;  %v566_v7 = vld [vmem:[%s1836_s29 + $0x760] sm:$0xff] }
 0x183   : > { %1267 = vmatpush1.bf16.msra.mxu1 %v1266_v8  ;;  %1141 = vmatprep.subr.bf16.mxu0 %v1140_v9  ;;  %v564_v8 = vld [vmem:[%s1836_s29 + $0x750] sm:$0xff]  ;;  %v1288_v9 = vpack.c.bf16 %v569_v2, %v565_v1  ;;  %v1162_v15 = vpack.c.bf16 %v566_v7, %v562_v6 }
 0x184   : > { %1269 = vmatprep.subr.bf16.mxu1 %v1268_v13  ;;  %v573_v13 = vld [vmem:[%s1836_s29 + $0x798] sm:$0xff]  ;;  %v1290_v16 = vpack.c.bf16 %v568_v10, %v564_v8 }
 0x186   : > { %1143 = vmatpush1.bf16.msra.mxu0 %v1142_v19  ;;  %v574_v19 = vld [vmem:[%s1836_s29 + $0x7a0] sm:$0xff] }
 0x187   : > { %1271 = vmatpush1.bf16.msra.mxu1 %v1270_v20  ;;  %1145 = vmatprep.subr.bf16.mxu0 %v1144_v21  ;;  %v572_v20 = vld [vmem:[%s1836_s29 + $0x790] sm:$0xff]  ;;  %v1292_v21 = vpack.c.bf16 %v577_v14, %v573_v13  ;;  %v1166_v27 = vpack.c.bf16 %v574_v19, %v570_v18 }
 0x188   : > { %1273 = vmatprep.subr.bf16.mxu1 %v1272_v25  ;;  %v581_v25 = vld [vmem:[%s1836_s29 + $0x7d8] sm:$0xff]  ;;  %v1294_v28 = vpack.c.bf16 %v576_v22, %v572_v20 }
 0x18a   : > { %1147 = vmatpush1.bf16.msra.mxu0 %v1146_v31  ;;  %v582_v31 = vld [vmem:[%s1836_s29 + $0x7e0] sm:$0xff] }
 0x18b   : > { %1275 = vmatpush1.bf16.msra.mxu1 %v1274_v32  ;;  %1149 = vmatprep.subr.bf16.mxu0 %v1148_v33  ;;  %v1296_v32 = vpack.c.bf16 %v585_v26, %v581_v25  ;;  %v580_v33 = vld [vmem:[%s1836_s29 + $0x7d0] sm:$0xff]  ;;  %v1170_v35 = vpack.c.bf16 %v582_v31, %v578_v30 }
 0x18c   : > { %1277 = vmatprep.subr.bf16.mxu1 %v1276_v37  ;;  %v1298_v36 = vpack.c.bf16 %v584_v34, %v580_v33  ;;  %v328_v37 = vld [vmem:[#allocation2 + $0x10] sm:$0xff] }
 0x18e   : > { %1151 = vmatpush1.bf16.msra.mxu0 %v1150_v43 }
 0x18f   : > { %1279 = vmatpush1.bf16.msra.mxu1 %v1278_v44  ;;  %1153 = vmatprep.subr.bf16.mxu0 %v1152_v45 }
 0x190   : > { %1281 = vmatprep.subr.bf16.mxu1 %v1280_v49 }
 0x192   : > { %1155 = vmatpush1.bf16.msra.mxu0 %v1154_v55 }
 0x193   : > { %1283 = vmatpush1.bf16.msra.mxu1 %v1282_v56  ;;  %1157 = vmatprep.subr.bf16.mxu0 %v1156_v57 }
 0x194   : > { %1285 = vmatprep.subr.bf16.mxu1 %v1284_v61 }
 0x196   : > { %1159 = vmatpush1.bf16.msra.mxu0 %v1158_v3 }
 0x197   : > { %1287 = vmatpush1.bf16.msra.mxu1 %v1286_v4  ;;  %1161 = vmatprep.subr.bf16.mxu0 %v1160_v5 }
 0x198   : > { %1289 = vmatprep.subr.bf16.mxu1 %v1288_v9 }
 0x19a   : > { %1163 = vmatpush1.bf16.msra.mxu0 %v1162_v15 }
 0x19b   : > { %1291 = vmatpush1.bf16.msra.mxu1 %v1290_v16  ;;  %1165 = vmatprep.subr.bf16.mxu0 %v1164_v17 }
 0x19c   : > { %1293 = vmatprep.subr.bf16.mxu1 %v1292_v21 }
 0x19e   : > { %1167 = vmatpush1.bf16.msra.mxu0 %v1166_v27 }
 0x19f   : > { %1295 = vmatpush1.bf16.msra.mxu1 %v1294_v28  ;;  %1169 = vmatprep.subr.bf16.mxu0 %v1168_v29 }
 0x1a0   : > { %1297 = vmatprep.subr.bf16.mxu1 %v1296_v32 }
 0x1a2   : > { %1171 = vmatpush1.bf16.msra.mxu0 %v1170_v35 }
 0x1a3   : > { %1299 = vmatpush1.bf16.msra.mxu1 %v1298_v36 }
 0x1a5   : > { %722 = vmatmul.mubr.f32.vlgmr.msra.gmra.mrb[0].mxu0 %v328_v37 }
 0x1a6   : > { %864 = vmatmul.mubr.f32.vlgmr.msra.gmra.mrb[0].mxu1 %v328_v37 }
 0x1a7   : > { %1498 = shalt.err (!%p1495_p8)
}
 0x1a8   : > { %s1499_s10 = scalar_lea.hbm %s2186_s4, 512  ;;  %p2208_p5 = pmov %p2207_p6 }
 0x1a9   : > { %p1500_p9 = scmp.ne.s32.totalorder %s2186_s4, %s1499_s10  ;;  %p1505_p7 = scmp.lt.u32.totalorder %s1499_s10, %s2186_s4 }
 0x1ab   : > { %p1501_p10 = pnand %p1500_p9, %p2208_p5 }
 0x1ad   : > { %p1502_p11 = pneg %p1501_p10 }
 0x1af   : > { %p1507_p1 = pnand %p1505_p7, %p1502_p11 }
 0x1b1   : > { %1510 = shalt.err (!%p1507_p1)
}
 0x1b2   : > { %p2209_p0 = pmov %p2208_p5  ;;  %s1043_s13 = sshll.u32 %s1597_s18, 9 }
 0x1b3   : > { %s891_s25 = sshll.u32 %s1843_s7, 4  ;;  %s2126_s11 = scalar_lea.hbm %s2185_s3, %s1043_s13  ;;  %s2128_s25 = int_to_ptr.vmem [resolvable:$true] %s891_s25 }
 0x1b4   : > { %1316 = dma.vmem_to_hbm [thread:$0]  (%p2209_p0), %s906_s23, 512, %s2186_s4, [#allocation11]  }
 0x1b5   : > { %s875_s18 = scalar_lea.sflag [#allocation5], %s1833_s14  ;;  %s1511_s23 = scalar_lea.vmem %s2128_s25, 512 }
 0x1b6   : > { %p1512_p6 = scmp.ne.s32.totalorder %s2128_s25, %s1511_s23  ;;  %p2210_p2 = scmp.ne.s32.totalorder %s2195_s26, 0 }
 0x1b7   : > { %s1614_s10 = smov [#allocation9]  }
 0x1b8   : > { %p1513_p3 = pnand %p1512_p6, %p2210_p2  ;;  %s1515_s12 = sshll.u32 %s1614_s10, 4  ;;  %s1516_s12 = int_to_ptr.vmem [resolvable:$false] %s1515_s12 }
 0x1b9   : > { %s1517_s8 = scalar_lea.vmem %s1516_s12, 1024  ;;  %p1518_p12 = scmp.lt.s32.totalorder %s2128_s25, %s1516_s12 }
 0x1ba   : > { %p1514_p4 = pneg %p1513_p3  ;;  %p1519_p13 = scmp.lt.s32.totalorder %s1517_s8, %s1511_s23 }
 0x1bc   : > { %p1520_p8 = por %p1519_p13, %p1518_p12 }
 0x1be   : > { %p1521_p9 = pnand %p1520_p8, %p1514_p4 }
 0x278   : > { %v723_v38 = vpop.f32.mrb[0].mxu0 }
 0x279   : > { %870 = vst [vmem:[%s1843_s7] sm:$0xff] %v723_v38  ;;  %v865_v39 = vpop.f32.mrb[0].mxu1  ;;  %v725_v40 = vpop.f32.mrb[1].mxu0 }
 0x27a   : > { %872 = vst [vmem:[%s1843_s7 + $0x10] sm:$0xff] %v865_v39  ;;  %871 = vst [vmem:[%s1843_s7 + $0x8] sm:$0xff] %v725_v40  ;;  %v867_v41 = vpop.f32.mrb[1].mxu1 }
 0x27b   : > { %873 = vst [vmem:[%s1843_s7 + $0x18] sm:$0xff] %v867_v41 }
 0x27c   : > { %1524 = shalt.err (!%p1521_p9)
}
 0x27d   : > { %s1525_s14 = scalar_lea.hbm %s2126_s11, 512  ;;  %s1529_s28 = scalar_lea.hbm %s2185_s3, 1024 }
 0x27e   : > { %p1526_p5 = scmp.ne.s32.totalorder %s2126_s11, %s1525_s14  ;;  %p1530_p7 = scmp.lt.u32.totalorder %s2126_s11, %s2185_s3 }
 0x27f   : > { %p1531_p1 = scmp.lt.u32.totalorder %s1529_s28, %s1525_s14  ;;  %p1533_p6 = scmp.lt.u32.totalorder %s1525_s14, %s2126_s11 }
 0x280   : > { %p1527_p10 = pnand %p1526_p5, %p2210_p2 }
 0x281   : > { %p1532_p0 = por %p1531_p1, %p1530_p7 }
 0x282   : > { %p1528_p11 = pneg %p1527_p10 }
 0x283   : > { %p1534_p3 = por %p1533_p6, %p1532_p0 }
 0x285   : > { %p1535_p4 = pnand %p1534_p3, %p1528_p11 }
 0x287   : > { %1538 = shalt.err (!%p1535_p4)
}
 0x288   : > { %1314 = dma.vmem_to_hbm [thread:$0]  (%p2210_p2), %s2128_s25, 512, %s2126_s11, %s875_s18  }
 0x289   : > { %p2211_p12 = scmp.eq.s32.totalorder %s1671_s21, 1 }
 0x28b   : > { %1576 = dma.done.wait (%p2211_p12), [#allocation11], 512   ;;  %p2212_p13 = pmov %p2211_p12 }
 0x28d   : > { %1578 = vsyncadd (%p2212_p13), [#allocation11], 4294966784 }
 0x28e PF: > { %s921_s13 = sand.u32 1, %s1585_s15   ;;  %p2213_p8 = scmp.ne.s32.totalorder %s2196_s27, 0 }
 0x28f   : > { %p2214_p9 = scmp.ge.s32.totalorder %s1605_s20, 2  ;;  %s922_s9 = scalar_lea.sflag [#allocation5], %s921_s13 }
 0x291   : > { %p1332_p5 = pnand %p2214_p9, %p2213_p8 }
 0x293   : > { %1580 = dma.done.wait (!%p1332_p5), %s922_s9, 512  }
 0x294   : > { %1582 = vsyncadd (!%p1332_p5), %s922_s9, 4294966784  ;;  %s21_s20 = sadd.s32 1, %s1605_s20   ;;  %s2215_s15 = smov %s1589_s16 }
 0x295   : > { %p18_p10 = scmp.ge.s32.totalorder %s21_s20, 4   ;;  %s2216_s16 = smov %s1593_s17 }
 0x296   : > { %s2217_s17 = smov %s1791_s24  ;;  %s2218_s18 = smov %s1601_s19 }
 0x297   : > { %s2219_s19 = smov %s2221_s6  ;;  %20 = sbr.rel (!%p18_p10) target bundleno = 7 (0x7), region = 98 }
 0x29e   :  { %927 = vsyncpa [#allocation4], 1 }
 0x29f   :  { %929 = vsyncpa [#allocation4 + $0x1], 1 }
 0x2a0   :  { %930 = vsyncpa [#allocation7], 1 }
 0x2a1   :  { %931 = vsyncpa [#allocation5], 1 }
 0x2a2   :  { %933 = vsyncpa [#allocation5 + $0x1], 1 }
 0x2a3   :  { %934 = vsyncpa [#allocation11], 1 }

</bundles_post_ra>
